<compile_context>
chip_gen: v7x
topology: tpu7x:2x2x1
jax: 0.10.0
libtpu: 0.0.40
codegen_flags: <defaults>
</compile_context>

<pallas_src>
import functools

import numpy as np
import jax
import jax.numpy as jnp
from jax.experimental import pallas as pl
from jax.experimental.pallas import tpu as pltpu

BN_EPS = 1e-5
LEAKY_SLOPE = 0.2

# Tiling parameters (per perf review): the plain conv kernel tolerates 4096 lanes; the
# fused tail holds two f32 accumulators so cap it at 2048 lanes.  Blocks are a few
# hundred KiB at Cin<=16 / K<=144, comfortably inside a 32 MiB scoped-VMEM budget on
# every generation (v5e/v6e/v7x).
MAX_TILE_NP_CONV = 4096
MAX_TILE_NP_TAIL = 2048
VMEM_LIMIT_BYTES = 32 * 1024 * 1024


def _round_up(v, m):
    return (v + m - 1) // m * m


# ----------------------------------------------------------------------------------
# Pallas kernels — all matmul outputs are (C_pad, tile_NP): channels on sublanes,
# flattened batch*spatial on the 128-lane axis (lane-dense stores / epilogue).
# ----------------------------------------------------------------------------------
def _conv_kernel(p_ref, w_ref, shift_ref, o_ref, *, act):
    """y = act( W(Cout_pad,K) @ patches(K,tile) + shift ); BN scale pre-folded into W.
    Patches arrive bf16 (halved HBM stream) and are upcast at load.
    TODO(synk): feed the MXU bf16 directly on real TPUs — the CPU/interpret DotThunk
    does not support BF16xBF16=F32, hence the f32 upcast before the dot."""
    p = p_ref[...].astype(jnp.float32)
    y = jnp.dot(w_ref[...], p, preferred_element_type=jnp.float32) + shift_ref[...]
    if act == "leaky":
        y = jnp.where(y >= 0, y, LEAKY_SLOPE * y)
    elif act == "sigmoid":
        # TODO(synk): pl.reciprocal(1 + exp(-y), approx=True) pushes the divide to the
        # EUP slot on v6e/v7x; plain divide kept for interpret-mode portability.
        y = 1.0 / (1.0 + jnp.exp(-y))
    o_ref[...] = y.astype(o_ref.dtype)


def _tail_kernel(ps_ref, pd_ref, ws_ref, wd_ref, sh1_ref, w2_ref, sh2_ref, o_ref):
    """Fused per-scale tail:
       concat(skip, deeper) -> concat-BN -> 3x3 conv -> BN -> LeakyReLU
                            -> [AdaptiveDropout = id] -> 1x1 conv -> BN -> LeakyReLU
    The concat is fused by splitting the 3x3 weights per branch (two matmuls on the
    resident tile); all BN scales are pre-folded into the weights."""
    ps = ps_ref[...].astype(jnp.float32)
    pd = pd_ref[...].astype(jnp.float32)
    y = jnp.dot(ws_ref[...], ps, preferred_element_type=jnp.float32)
    y = y + jnp.dot(wd_ref[...], pd, preferred_element_type=jnp.float32)
    y = y + sh1_ref[...]
    y = jnp.where(y >= 0, y, LEAKY_SLOPE * y)
    z = jnp.dot(w2_ref[...], y, preferred_element_type=jnp.float32) + sh2_ref[...]
    o_ref[...] = jnp.where(z >= 0, z, LEAKY_SLOPE * z).astype(o_ref.dtype)


def _bilinear_up_kernel(x_ref, mh_ref, mwt_ref, o_ref):
    """Separable bilinear 2x upsample (align_corners=True), one image per grid step:
         t = Mh(Ho,H) @ x(H,W);  y = t @ MwT(W,Wo)
    Interp matrices are shared full blocks (index_map -> (0,0)); output is bf16.
    TODO(synk): at the deepest scales Wo < 128 -> masked stores; fully fusing the
    upsample into _tail_kernel removes this tensor from HBM altogether."""
    x = x_ref[0].astype(jnp.float32)
    t = jnp.dot(mh_ref[...], x, preferred_element_type=jnp.float32)
    y = jnp.dot(t, mwt_ref[...], preferred_element_type=jnp.float32)
    o_ref[0] = y.astype(o_ref.dtype)


# ----------------------------------------------------------------------------------
# Glue helpers (plain JAX: reflect padding, channel-first im2col, BN folding)
# ----------------------------------------------------------------------------------
def _im2col_cf(xp, kh, kw, stride):
    """Channel-first im2col.  xp: (Cin_pad, N, Hp, Wp) -> (kh*kw*Cin_pad, N*Ho*Wo).
    Stride applied during patch extraction (no redundant full-res compute); dtype is
    preserved (bf16 in -> bf16 patches in HBM).
    TODO(synk): move this into the kernel (accumulate tap matmuls from shifted slices)
    to avoid the kh*kw x HBM expansion entirely."""
    cin, n, hp, wp = xp.shape
    hout = (hp - kh) // stride + 1
    wout = (wp - kw) // stride + 1
    taps = []
    for i in range(kh):
        for j in range(kw):
            t = xp[:, :, i:i + (hout - 1) * stride + 1:stride,
                         j:j + (wout - 1) * stride + 1:stride]
            taps.append(t.reshape(cin, n * hout * wout))
    return jnp.concatenate(taps, axis=0), hout, wout


def _bn_fold(bn_p, b):
    """eval-mode BatchNorm + conv bias -> per-output-channel (scale, shift)."""
    s = bn_p["gamma"] / jnp.sqrt(bn_p["var"] + BN_EPS)
    return s, (b - bn_p["mean"]) * s + bn_p["beta"]


# ----------------------------------------------------------------------------------
# Pallas wrappers
# ----------------------------------------------------------------------------------
def _conv_matmul(patches, wT, shift, act, out_dtype):
    """patches: (K, NP) bf16; wT: (Cout_pad, K) f32 (BN scale folded); shift: (Cout_pad,).
    NP-tiled grid, weights/shift as shared full blocks, lane-dense output."""
    cpad, k = wT.shape
    np_ = patches.shape[1]
    tile = min(MAX_TILE_NP_CONV, _round_up(np_, 128))
    np_pad = _round_up(np_, tile)
    if np_pad != np_:
        patches = jnp.pad(patches, ((0, 0), (0, np_pad - np_)))
    y = pl.pallas_call(
        functools.partial(_conv_kernel, act=act),
        grid=(np_pad // tile,),
        in_specs=[
            pl.BlockSpec((k, tile), lambda i: (0, i)),
            pl.BlockSpec((cpad, k), lambda i: (0, 0)),
            pl.BlockSpec((cpad, 1), lambda i: (0, 0)),
        ],
        out_specs=pl.BlockSpec((cpad, tile), lambda i: (0, i)),
        out_shape=jax.ShapeDtypeStruct((cpad, np_pad), out_dtype),
        compiler_params=pltpu.CompilerParams(
            dimension_semantics=("parallel",),
            vmem_limit_bytes=VMEM_LIMIT_BYTES),
    )(patches, wT.astype(jnp.float32), shift.reshape(-1, 1).astype(jnp.float32))
    return y[:, :np_] if np_pad != np_ else y


def conv_block(x, conv_p, bn_p, *, stride=1, act="leaky", out_dtype=jnp.bfloat16):
    """x: (Cin_pad, N, H, W) bf16 -> (Cout_pad, N, Ho, Wo).  Matches PyTorch
    ReflectionPad2d((k-1)//2) + Conv2d(stride) + [BatchNorm2d eval] + activation."""
    w, b = conv_p["w"], conv_p["b"]                     # (kh, kw, cin, cout)
    kh, kw, cin, cout = w.shape
    cin_pad, n = x.shape[0], x.shape[1]
    cout_pad = _round_up(cout, 8)
    if bn_p is not None:
        scale, shift = _bn_fold(bn_p, b)
    else:
        scale, shift = jnp.ones_like(b), b
    w = w * scale[None, None, None, :]                  # BN scale folded into weights
    w = jnp.pad(w, ((0, 0), (0, 0), (0, cin_pad - cin), (0, cout_pad - cout)))
    wT = w.transpose(3, 0, 1, 2).reshape(cout_pad, kh * kw * cin_pad)
    shift = jnp.pad(shift, (0, cout_pad - cout))
    pad = (kh - 1) // 2
    if pad:
        assert pad < x.shape[2] and pad < x.shape[3], "reflect pad needs pad < dim"
        xp = jnp.pad(x, ((0, 0), (0, 0), (pad, pad), (pad, pad)), mode="reflect")
    else:
        xp = x
    patches, hout, wout = _im2col_cf(xp, kh, kw, stride)
    y = _conv_matmul(patches, wT, shift, act, out_dtype)
    return y.reshape(cout_pad, n, hout, wout)


def fused_tail(s, d, p, *, out_dtype=jnp.bfloat16):
    """Fused per-scale tail (see _tail_kernel).
    s: (Cs_pad, N, H, W) skip branch; d: (Cd_pad, N, H, W) upsampled deeper branch."""
    cs_pad, n, _, _ = s.shape
    cd_pad = d.shape[0]

    w1, b1 = p["up_conv"]["w"], p["up_conv"]["b"]        # (3, 3, cs+cd, cu)
    kh, kw, cin_tot, cu = w1.shape
    cs = p["skip_conv"]["w"].shape[3]
    cd = cin_tot - cs
    # concat-BN folded (exactly, eval mode) into the 3x3 conv's input side
    cbn = p["concat_bn"]
    s_in = cbn["gamma"] / jnp.sqrt(cbn["var"] + BN_EPS)
    t_in = cbn["beta"] - cbn["mean"] * s_in
    b1 = b1 + jnp.einsum("ijco,c->o", w1, t_in)
    w1 = w1 * s_in[None, None, :, None]
    # conv bias + up_bn folded into the output side
    sc1, sh1 = _bn_fold(p["up_bn"], b1)
    w1 = w1 * sc1[None, None, None, :]
    cu_pad = _round_up(cu, 8)
    w1s = jnp.pad(w1[:, :, :cs, :], ((0, 0), (0, 0), (0, cs_pad - cs), (0, cu_pad - cu)))
    w1d = jnp.pad(w1[:, :, cs:, :], ((0, 0), (0, 0), (0, cd_pad - cd), (0, cu_pad - cu)))
    wTs = w1s.transpose(3, 0, 1, 2).reshape(cu_pad, kh * kw * cs_pad)
    wTd = w1d.transpose(3, 0, 1, 2).reshape(cu_pad, kh * kw * cd_pad)
    sh1 = jnp.pad(sh1, (0, cu_pad - cu)).reshape(-1, 1)

    w2, b2 = p["up1x1_conv"]["w"], p["up1x1_conv"]["b"]  # (1, 1, cu, cu2)
    cu2 = w2.shape[3]
    cu2_pad = _round_up(cu2, 8)
    sc2, sh2 = _bn_fold(p["up1x1_bn"], b2)
    w2T = jnp.pad((w2[0, 0] * sc2[None, :]).T, ((0, cu2_pad - cu2), (0, cu_pad - cu)))
    sh2 = jnp.pad(sh2, (0, cu2_pad - cu2)).reshape(-1, 1)

    pad = (kh - 1) // 2
    sp = jnp.pad(s, ((0, 0), (0, 0), (pad, pad), (pad, pad)), mode="reflect")
    dp = jnp.pad(d, ((0, 0), (0, 0), (pad, pad), (pad, pad)), mode="reflect")
    ps, hout, wout = _im2col_cf(sp, kh, kw, 1)
    pd, _, _ = _im2col_cf(dp, kh, kw, 1)

    ks, kd = ps.shape[0], pd.shape[0]
    np_ = ps.shape[1]
    tile = min(MAX_TILE_NP_TAIL, _round_up(np_, 128))
    np_pad = _round_up(np_, tile)
    if np_pad != np_:
        ps = jnp.pad(ps, ((0, 0), (0, np_pad - np_)))
        pd = jnp.pad(pd, ((0, 0), (0, np_pad - np_)))

    z = pl.pallas_call(
        _tail_kernel,
        grid=(np_pad // tile,),
        in_specs=[
            pl.BlockSpec((ks, tile), lambda i: (0, i)),
            pl.BlockSpec((kd, tile), lambda i: (0, i)),
            pl.BlockSpec((cu_pad, ks), lambda i: (0, 0)),
            pl.BlockSpec((cu_pad, kd), lambda i: (0, 0)),
            pl.BlockSpec((cu_pad, 1), lambda i: (0, 0)),
            pl.BlockSpec((cu2_pad, cu_pad), lambda i: (0, 0)),
            pl.BlockSpec((cu2_pad, 1), lambda i: (0, 0)),
        ],
        out_specs=pl.BlockSpec((cu2_pad, tile), lambda i: (0, i)),
        out_shape=jax.ShapeDtypeStruct((cu2_pad, np_pad), out_dtype),
        compiler_params=pltpu.CompilerParams(
            dimension_semantics=("parallel",),
            vmem_limit_bytes=VMEM_LIMIT_BYTES),
    )(ps, pd, wTs.astype(jnp.float32), wTd.astype(jnp.float32),
      sh1.astype(jnp.float32), w2T.astype(jnp.float32), sh2.astype(jnp.float32))
    if np_pad != np_:
        z = z[:, :np_]
    return z.reshape(cu2_pad, n, hout, wout)


def _interp_matrix(n_in, n_out):
    """PyTorch nn.Upsample(mode='bilinear', align_corners=True) 1-D interpolation matrix."""
    a = np.zeros((n_out, n_in), np.float32)
    if n_in == 1:
        a[:, 0] = 1.0
        return a
    src = np.arange(n_out, dtype=np.float64) * (n_in - 1) / (n_out - 1)
    lo = np.clip(np.floor(src).astype(np.int64), 0, n_in - 1)
    hi = np.minimum(lo + 1, n_in - 1)
    frac = (src - lo).astype(np.float32)
    a[np.arange(n_out), lo] += 1.0 - frac
    a[np.arange(n_out), hi] += frac
    return a


def bilinear_upsample_2x(x):
    """x: (C_pad, N, H, W) bf16 -> (C_pad, N, 2H, 2W) bf16, bilinear align_corners=True.
    Grid over the C*N images ("parallel"); interp matrices passed once as 2-D blocks."""
    c, n, h, w = x.shape
    ho, wo = 2 * h, 2 * w
    b = c * n
    mh = jnp.asarray(_interp_matrix(h, ho))          # (Ho, H)  f32, shared
    mwt = jnp.asarray(_interp_matrix(w, wo).T)       # (W, Wo)  f32, shared
    y = pl.pallas_call(
        _bilinear_up_kernel,
        grid=(b,),
        in_specs=[
            pl.BlockSpec((1, h, w), lambda i: (i, 0, 0)),
            pl.BlockSpec((ho, h), lambda i: (0, 0)),
            pl.BlockSpec((w, wo), lambda i: (0, 0)),
        ],
        out_specs=pl.BlockSpec((1, ho, wo), lambda i: (i, 0, 0)),
        out_shape=jax.ShapeDtypeStruct((b, ho, wo), jnp.bfloat16),
        compiler_params=pltpu.CompilerParams(
            dimension_semantics=("parallel",),
            vmem_limit_bytes=VMEM_LIMIT_BYTES),
    )(x.reshape(b, h, w), mh, mwt)
    return y.reshape(c, n, ho, wo)


# ----------------------------------------------------------------------------------
# Parameters (deterministic, synthetic)
# ----------------------------------------------------------------------------------
def init_params(key, cfg):
    keys = iter(jax.random.split(key, 256))

    def conv_p(cin, cout, k):
        fan_in = cin * k * k
        return {
            "w": jax.random.normal(next(keys), (k, k, cin, cout), jnp.float32) / np.sqrt(fan_in),
            "b": 0.1 * jax.random.normal(next(keys), (cout,), jnp.float32),
        }

    def bn_p(c):
        return {
            "gamma": 1.0 + 0.1 * jax.random.normal(next(keys), (c,), jnp.float32),
            "beta": 0.1 * jax.random.normal(next(keys), (c,), jnp.float32),
            "mean": 0.1 * jax.random.normal(next(keys), (c,), jnp.float32),
            "var": 1.0 + 0.5 * jax.random.uniform(next(keys), (c,), jnp.float32),
        }

    levels = []
    depth = cfg["num_input_channels"]
    n = len(cfg["down"])
    for i in range(n):
        last = i == n - 1
        k_ch = cfg["down"][i] if last else cfg["up"][i + 1]
        levels.append({
            "skip_conv": conv_p(depth, cfg["skip"][i], cfg["k_skip"]),
            "skip_bn": bn_p(cfg["skip"][i]),
            "down_conv1": conv_p(depth, cfg["down"][i], cfg["k_down"]),
            "down_bn1": bn_p(cfg["down"][i]),
            "down_conv2": conv_p(cfg["down"][i], cfg["down"][i], cfg["k_down"]),
            "down_bn2": bn_p(cfg["down"][i]),
            "concat_bn": bn_p(cfg["skip"][i] + k_ch),
            "up_conv": conv_p(cfg["skip"][i] + k_ch, cfg["up"][i], cfg["k_up"]),
            "up_bn": bn_p(cfg["up"][i]),
            "up1x1_conv": conv_p(cfg["up"][i], cfg["up"][i], 1),
            "up1x1_bn": bn_p(cfg["up"][i]),
        })
        depth = cfg["down"][i]
    return {"levels": levels, "out_conv": conv_p(cfg["up"][0], cfg["num_output_channels"], 1)}


# ----------------------------------------------------------------------------------
# Forward pass
# ----------------------------------------------------------------------------------
def skip_adadrop_forward(params, x_nchw):
    x = jnp.transpose(x_nchw, (1, 0, 2, 3)).astype(jnp.float32)  # NCHW -> (C, N, H, W)
    cin = x.shape[0]
    x = jnp.pad(x, ((0, _round_up(cin, 8) - cin), (0, 0), (0, 0), (0, 0)))
    x = x.astype(jnp.bfloat16)                                   # bf16 activations in HBM
    n_levels = len(params["levels"])

    def level(x, i):
        p = params["levels"][i]
        last = i == n_levels - 1
        # skip branch: 1x1 conv -> BN -> LeakyReLU
        s = conv_block(x, p["skip_conv"], p["skip_bn"], act="leaky")
        # deeper branch (stride-2 handled inside patch extraction)
        d = conv_block(x, p["down_conv1"], p["down_bn1"], stride=2, act="leaky")
        # AdaptiveDropout -> identity (eval mode)
        d = conv_block(d, p["down_conv2"], p["down_bn2"], act="leaky")
        if not last:
            d = level(d, i + 1)
        d = bilinear_upsample_2x(d)
        # concat + concat-BN + 3x3 conv + BN + act + [AdaptiveDropout=id] + 1x1 + BN + act
        return fused_tail(s, d, p)

    y = level(x, 0)
    y = conv_block(y, params["out_conv"], None, act="sigmoid", out_dtype=jnp.float32)
    cout = params["out_conv"]["w"].shape[3]
    return jnp.transpose(y[:cout], (1, 0, 2, 3))                 # (C, N, H, W) -> NCHW


# ----------------------------------------------------------------------------------
if __name__ == "__main__":
    # small configuration consistent with the module (3 scales so that a 16x16 input
    # survives the /2 downsampling chain: 16 -> 8 -> 4 -> 2)
    cfg = dict(
        num_input_channels=2, num_output_channels=3,
        down=[8, 8, 8], up=[8, 8, 8], skip=[4, 4, 4],
        k_down=3, k_up=3, k_skip=1,
    )
    key = jax.random.PRNGKey(0)
    pkey, xkey = jax.random.split(key)
    params = init_params(pkey, cfg)
    x = jax.random.normal(xkey, (2, cfg["num_input_channels"], 16, 16), jnp.float32)

    fwd = jax.jit(skip_adadrop_forward)
    out = fwd(params, x)
    jax.block_until_ready(out)

    assert out.shape == (2, 3, 16, 16), out.shape
    assert bool(jnp.all(jnp.isfinite(out)))
    assert bool(jnp.all((out >= 0.0) & (out <= 1.0)))   # sigmoid head
    print("KERNEL_OK")
</pallas_src>

<mosaic_0001>
module attributes {stable_mosaic.version = 11 : i64} {
  func.func @_conv_kernel(%arg0: i32, %arg1: memref<8x512xbf16, #tpu.memory_space<vmem>>, %arg2: memref<8x8xf32, #tpu.memory_space<vmem>>, %arg3: memref<8x1xf32, #tpu.memory_space<vmem>>, %arg4: memref<8x512xbf16, #tpu.memory_space<vmem>>) attributes {dimension_semantics = [#tpu.dimension_semantics<parallel>], iteration_bounds = array<i64: 1>, scalar_prefetch = 0 : i64, scratch_operands = 0 : i64, tpu.core_type = #tpu.core_type<tc>, window_params = [{transform_indices = @transform_0, window_bounds = array<i64: 8, 512>}, {pipeline_mode = #tpu.pipeline_mode<synchronous>, transform_indices = @transform_1, window_bounds = array<i64: 8, 8>}, {pipeline_mode = #tpu.pipeline_mode<synchronous>, transform_indices = @transform_2, window_bounds = array<i64: 8, 1>}, {transform_indices = @transform_3, window_bounds = array<i64: 8, 512>}]} {
    %c0 = arith.constant 0 : index
    %c0_0 = arith.constant 0 : index
    %0 = vector.load %arg1[%c0, %c0_0] : memref<8x512xbf16, #tpu.memory_space<vmem>>, vector<8x512xbf16>
    %1 = arith.extf %0 : vector<8x512xbf16> to vector<8x512xf32>
    %c0_1 = arith.constant 0 : index
    %c0_2 = arith.constant 0 : index
    %2 = vector.load %arg2[%c0_1, %c0_2] : memref<8x8xf32, #tpu.memory_space<vmem>>, vector<8x8xf32>
    %cst = arith.constant dense<0.000000e+00> : vector<8x512xf32>
    %3 = tpu.matmul %2, %1, %cst {dimension_numbers = #tpu.dot_dimension_numbers<[1], [0], [0], [1], [0, 0, 1, 1], [], []>} : vector<8x8xf32>, vector<8x512xf32>, vector<8x512xf32> -> vector<8x512xf32>
    %c0_3 = arith.constant 0 : index
    %c0_4 = arith.constant 0 : index
    %4 = vector.load %arg3[%c0_3, %c0_4] : memref<8x1xf32, #tpu.memory_space<vmem>>, vector<8x1xf32>
    %5 = vector.broadcast %4 : vector<8x1xf32> to vector<8x512xf32>
    %6 = arith.addf %3, %5 : vector<8x512xf32>
    %cst_5 = arith.constant 0.000000e+00 : f32
    %7 = vector.broadcast %cst_5 : f32 to vector<8x512xf32>
    %8 = arith.cmpf oge, %6, %7 : vector<8x512xf32>
    %cst_6 = arith.constant 2.000000e-01 : f32
    %9 = vector.broadcast %cst_6 : f32 to vector<8x512xf32>
    %10 = arith.mulf %9, %6 : vector<8x512xf32>
    %11 = arith.select %8, %6, %10 : vector<8x512xi1>, vector<8x512xf32>
    %12 = arith.truncf %11 : vector<8x512xf32> to vector<8x512xbf16>
    %c0_7 = arith.constant 0 : index
    %c0_8 = arith.constant 0 : index
    %13 = vector.load %arg4[%c0_7, %c0_8] : memref<8x512xbf16, #tpu.memory_space<vmem>>, vector<8x512xbf16>
    tpu.vector_store %arg4[%c0_7, %c0_8], %12 {strides = array<i32>} : memref<8x512xbf16, #tpu.memory_space<vmem>>, vector<8x512xbf16>,
    return
  }
  func.func @transform_0(%arg0: i32) -> (i32, i32) {
    %c0_i32 = arith.constant 0 : i32
    %c0_i32_0 = arith.constant 0 : i32
    return %c0_i32, %arg0 : i32, i32
  }
  func.func @transform_1(%arg0: i32) -> (i32, i32) {
    %c0_i32 = arith.constant 0 : i32
    %c0_i32_0 = arith.constant 0 : i32
    %c0_i32_1 = arith.constant 0 : i32
    return %c0_i32, %c0_i32_0 : i32, i32
  }
  func.func @transform_2(%arg0: i32) -> (i32, i32) {
    %c0_i32 = arith.constant 0 : i32
    %c0_i32_0 = arith.constant 0 : i32
    %c0_i32_1 = arith.constant 0 : i32
    return %c0_i32, %c0_i32_0 : i32, i32
  }
  func.func @transform_3(%arg0: i32) -> (i32, i32) {
    %c0_i32 = arith.constant 0 : i32
    %c0_i32_0 = arith.constant 0 : i32
    return %c0_i32, %arg0 : i32, i32
  }
}

module attributes {stable_mosaic.version = 11 : i64} {
  func.func @_conv_kernel(%arg0: i32, %arg1: memref<72x128xbf16, #tpu.memory_space<vmem>>, %arg2: memref<8x72xf32, #tpu.memory_space<vmem>>, %arg3: memref<8x1xf32, #tpu.memory_space<vmem>>, %arg4: memref<8x128xbf16, #tpu.memory_space<vmem>>) attributes {dimension_semantics = [#tpu.dimension_semantics<parallel>], iteration_bounds = array<i64: 1>, scalar_prefetch = 0 : i64, scratch_operands = 0 : i64, tpu.core_type = #tpu.core_type<tc>, window_params = [{transform_indices = @transform_0, window_bounds = array<i64: 72, 128>}, {pipeline_mode = #tpu.pipeline_mode<synchronous>, transform_indices = @transform_1, window_bounds = array<i64: 8, 72>}, {pipeline_mode = #tpu.pipeline_mode<synchronous>, transform_indices = @transform_2, window_bounds = array<i64: 8, 1>}, {transform_indices = @transform_3, window_bounds = array<i64: 8, 128>}]} {
    %c0 = arith.constant 0 : index
    %c0_0 = arith.constant 0 : index
    %0 = vector.load %arg1[%c0, %c0_0] : memref<72x128xbf16, #tpu.memory_space<vmem>>, vector<72x128xbf16>
    %1 = arith.extf %0 : vector<72x128xbf16> to vector<72x128xf32>
    %c0_1 = arith.constant 0 : index
    %c0_2 = arith.constant 0 : index
    %2 = vector.load %arg2[%c0_1, %c0_2] : memref<8x72xf32, #tpu.memory_space<vmem>>, vector<8x72xf32>
    %cst = arith.constant dense<0.000000e+00> : vector<8x128xf32>
    %3 = tpu.matmul %2, %1, %cst {dimension_numbers = #tpu.dot_dimension_numbers<[1], [0], [0], [1], [0, 0, 1, 1], [], []>} : vector<8x72xf32>, vector<72x128xf32>, vector<8x128xf32> -> vector<8x128xf32>
    %c0_3 = arith.constant 0 : index
    %c0_4 = arith.constant 0 : index
    %4 = vector.load %arg3[%c0_3, %c0_4] : memref<8x1xf32, #tpu.memory_space<vmem>>, vector<8x1xf32>
    %5 = vector.broadcast %4 : vector<8x1xf32> to vector<8x128xf32>
    %6 = arith.addf %3, %5 : vector<8x128xf32>
    %cst_5 = arith.constant 0.000000e+00 : f32
    %7 = vector.broadcast %cst_5 : f32 to vector<8x128xf32>
    %8 = arith.cmpf oge, %6, %7 : vector<8x128xf32>
    %cst_6 = arith.constant 2.000000e-01 : f32
    %9 = vector.broadcast %cst_6 : f32 to vector<8x128xf32>
    %10 = arith.mulf %9, %6 : vector<8x128xf32>
    %11 = arith.select %8, %6, %10 : vector<8x128xi1>, vector<8x128xf32>
    %12 = arith.truncf %11 : vector<8x128xf32> to vector<8x128xbf16>
    %c0_7 = arith.constant 0 : index
    %c0_8 = arith.constant 0 : index
    %13 = vector.load %arg4[%c0_7, %c0_8] : memref<8x128xbf16, #tpu.memory_space<vmem>>, vector<8x128xbf16>
    tpu.vector_store %arg4[%c0_7, %c0_8], %12 {strides = array<i32>} : memref<8x128xbf16, #tpu.memory_space<vmem>>, vector<8x128xbf16>,
    return
  }
  func.func @transform_0(%arg0: i32) -> (i32, i32) {
    %c0_i32 = arith.constant 0 : i32
    %c0_i32_0 = arith.constant 0 : i32
    return %c0_i32, %arg0 : i32, i32
  }
  func.func @transform_1(%arg0: i32) -> (i32, i32) {
    %c0_i32 = arith.constant 0 : i32
    %c0_i32_0 = arith.constant 0 : i32
    %c0_i32_1 = arith.constant 0 : i32
    return %c0_i32, %c0_i32_0 : i32, i32
  }
  func.func @transform_2(%arg0: i32) -> (i32, i32) {
    %c0_i32 = arith.constant 0 : i32
    %c0_i32_0 = arith.constant 0 : i32
    %c0_i32_1 = arith.constant 0 : i32
    return %c0_i32, %c0_i32_0 : i32, i32
  }
  func.func @transform_3(%arg0: i32) -> (i32, i32) {
    %c0_i32 = arith.constant 0 : i32
    %c0_i32_0 = arith.constant 0 : i32
    return %c0_i32, %arg0 : i32, i32
  }
}

module attributes {stable_mosaic.version = 11 : i64} {
  func.func @_conv_kernel(%arg0: i32, %arg1: memref<8x128xbf16, #tpu.memory_space<vmem>>, %arg2: memref<8x8xf32, #tpu.memory_space<vmem>>, %arg3: memref<8x1xf32, #tpu.memory_space<vmem>>, %arg4: memref<8x128xbf16, #tpu.memory_space<vmem>>) attributes {dimension_semantics = [#tpu.dimension_semantics<parallel>], iteration_bounds = array<i64: 1>, scalar_prefetch = 0 : i64, scratch_operands = 0 : i64, tpu.core_type = #tpu.core_type<tc>, window_params = [{transform_indices = @transform_0, window_bounds = array<i64: 8, 128>}, {pipeline_mode = #tpu.pipeline_mode<synchronous>, transform_indices = @transform_1, window_bounds = array<i64: 8, 8>}, {pipeline_mode = #tpu.pipeline_mode<synchronous>, transform_indices = @transform_2, window_bounds = array<i64: 8, 1>}, {transform_indices = @transform_3, window_bounds = array<i64: 8, 128>}]} {
    %c0 = arith.constant 0 : index
    %c0_0 = arith.constant 0 : index
    %0 = vector.load %arg1[%c0, %c0_0] : memref<8x128xbf16, #tpu.memory_space<vmem>>, vector<8x128xbf16>
    %1 = arith.extf %0 : vector<8x128xbf16> to vector<8x128xf32>
    %c0_1 = arith.constant 0 : index
    %c0_2 = arith.constant 0 : index
    %2 = vector.load %arg2[%c0_1, %c0_2] : memref<8x8xf32, #tpu.memory_space<vmem>>, vector<8x8xf32>
    %cst = arith.constant dense<0.000000e+00> : vector<8x128xf32>
    %3 = tpu.matmul %2, %1, %cst {dimension_numbers = #tpu.dot_dimension_numbers<[1], [0], [0], [1], [0, 0, 1, 1], [], []>} : vector<8x8xf32>, vector<8x128xf32>, vector<8x128xf32> -> vector<8x128xf32>
    %c0_3 = arith.constant 0 : index
    %c0_4 = arith.constant 0 : index
    %4 = vector.load %arg3[%c0_3, %c0_4] : memref<8x1xf32, #tpu.memory_space<vmem>>, vector<8x1xf32>
    %5 = vector.broadcast %4 : vector<8x1xf32> to vector<8x128xf32>
    %6 = arith.addf %3, %5 : vector<8x128xf32>
    %cst_5 = arith.constant 0.000000e+00 : f32
    %7 = vector.broadcast %cst_5 : f32 to vector<8x128xf32>
    %8 = arith.cmpf oge, %6, %7 : vector<8x128xf32>
    %cst_6 = arith.constant 2.000000e-01 : f32
    %9 = vector.broadcast %cst_6 : f32 to vector<8x128xf32>
    %10 = arith.mulf %9, %6 : vector<8x128xf32>
    %11 = arith.select %8, %6, %10 : vector<8x128xi1>, vector<8x128xf32>
    %12 = arith.truncf %11 : vector<8x128xf32> to vector<8x128xbf16>
    %c0_7 = arith.constant 0 : index
    %c0_8 = arith.constant 0 : index
    %13 = vector.load %arg4[%c0_7, %c0_8] : memref<8x128xbf16, #tpu.memory_space<vmem>>, vector<8x128xbf16>
    tpu.vector_store %arg4[%c0_7, %c0_8], %12 {strides = array<i32>} : memref<8x128xbf16, #tpu.memory_space<vmem>>, vector<8x128xbf16>,
    return
  }
  func.func @transform_0(%arg0: i32) -> (i32, i32) {
    %c0_i32 = arith.constant 0 : i32
    %c0_i32_0 = arith.constant 0 : i32
    return %c0_i32, %arg0 : i32, i32
  }
  func.func @transform_1(%arg0: i32) -> (i32, i32) {
    %c0_i32 = arith.constant 0 : i32
    %c0_i32_0 = arith.constant 0 : i32
    %c0_i32_1 = arith.constant 0 : i32
    return %c0_i32, %c0_i32_0 : i32, i32
  }
  func.func @transform_2(%arg0: i32) -> (i32, i32) {
    %c0_i32 = arith.constant 0 : i32
    %c0_i32_0 = arith.constant 0 : i32
    %c0_i32_1 = arith.constant 0 : i32
    return %c0_i32, %c0_i32_0 : i32, i32
  }
  func.func @transform_3(%arg0: i32) -> (i32, i32) {
    %c0_i32 = arith.constant 0 : i32
    %c0_i32_0 = arith.constant 0 : i32
    return %c0_i32, %arg0 : i32, i32
  }
}

module attributes {stable_mosaic.version = 11 : i64} {
  func.func @_bilinear_up_kernel(%arg0: i32, %arg1: memref<1x2x2xbf16, #tpu.memory_space<vmem>>, %arg2: memref<4x2xf32, #tpu.memory_space<vmem>>, %arg3: memref<2x4xf32, #tpu.memory_space<vmem>>, %arg4: memref<1x4x4xbf16, #tpu.memory_space<vmem>>) attributes {dimension_semantics = [#tpu.dimension_semantics<parallel>], iteration_bounds = array<i64: 16>, scalar_prefetch = 0 : i64, scratch_operands = 0 : i64, tpu.core_type = #tpu.core_type<tc>, window_params = [{transform_indices = @transform_0, window_bounds = array<i64: 1, 2, 2>}, {pipeline_mode = #tpu.pipeline_mode<synchronous>, transform_indices = @transform_1, window_bounds = array<i64: 4, 2>}, {pipeline_mode = #tpu.pipeline_mode<synchronous>, transform_indices = @transform_2, window_bounds = array<i64: 2, 4>}, {transform_indices = @transform_3, window_bounds = array<i64: 1, 4, 4>}]} {
    %c0 = arith.constant 0 : index
    %c0_0 = arith.constant 0 : index
    %c0_1 = arith.constant 0 : index
    %0 = vector.load %arg1[%c0, %c0_0, %c0_1] : memref<1x2x2xbf16, #tpu.memory_space<vmem>>, vector<1x2x2xbf16>
    %1 = vector.shape_cast %0 : vector<1x2x2xbf16> to vector<2x2xbf16>
    %2 = arith.extf %1 : vector<2x2xbf16> to vector<2x2xf32>
    %c0_2 = arith.constant 0 : index
    %c0_3 = arith.constant 0 : index
    %3 = vector.load %arg2[%c0_2, %c0_3] : memref<4x2xf32, #tpu.memory_space<vmem>>, vector<4x2xf32>
    %cst = arith.constant dense<0.000000e+00> : vector<4x2xf32>
    %4 = tpu.matmul %3, %2, %cst {dimension_numbers = #tpu.dot_dimension_numbers<[1], [0], [0], [1], [0, 0, 1, 1], [], []>} : vector<4x2xf32>, vector<2x2xf32>, vector<4x2xf32> -> vector<4x2xf32>
    %c0_4 = arith.constant 0 : index
    %c0_5 = arith.constant 0 : index
    %5 = vector.load %arg3[%c0_4, %c0_5] : memref<2x4xf32, #tpu.memory_space<vmem>>, vector<2x4xf32>
    %cst_6 = arith.constant dense<0.000000e+00> : vector<4x4xf32>
    %6 = tpu.matmul %4, %5, %cst_6 {dimension_numbers = #tpu.dot_dimension_numbers<[1], [0], [0], [1], [0, 0, 1, 1], [], []>} : vector<4x2xf32>, vector<2x4xf32>, vector<4x4xf32> -> vector<4x4xf32>
    %7 = arith.truncf %6 : vector<4x4xf32> to vector<4x4xbf16>
    %c0_7 = arith.constant 0 : index
    %c0_8 = arith.constant 0 : index
    %c0_9 = arith.constant 0 : index
    %8 = vector.load %arg4[%c0_7, %c0_8, %c0_9] : memref<1x4x4xbf16, #tpu.memory_space<vmem>>, vector<1x4x4xbf16>
    %9 = vector.shape_cast %8 : vector<1x4x4xbf16> to vector<4x4xbf16>
    %10 = vector.shape_cast %7 : vector<4x4xbf16> to vector<1x4x4xbf16>
    tpu.vector_store %arg4[%c0_7, %c0_8, %c0_9], %10 {strides = array<i32>} : memref<1x4x4xbf16, #tpu.memory_space<vmem>>, vector<1x4x4xbf16>,
    return
  }
  func.func @transform_0(%arg0: i32) -> (i32, i32, i32) {
    %c0_i32 = arith.constant 0 : i32
    %c0_i32_0 = arith.constant 0 : i32
    %c0_i32_1 = arith.constant 0 : i32
    return %arg0, %c0_i32, %c0_i32_0 : i32, i32, i32
  }
  func.func @transform_1(%arg0: i32) -> (i32, i32) {
    %c0_i32 = arith.constant 0 : i32
    %c0_i32_0 = arith.constant 0 : i32
    %c0_i32_1 = arith.constant 0 : i32
    return %c0_i32, %c0_i32_0 : i32, i32
  }
  func.func @transform_2(%arg0: i32) -> (i32, i32) {
    %c0_i32 = arith.constant 0 : i32
    %c0_i32_0 = arith.constant 0 : i32
    %c0_i32_1 = arith.constant 0 : i32
    return %c0_i32, %c0_i32_0 : i32, i32
  }
  func.func @transform_3(%arg0: i32) -> (i32, i32, i32) {
    %c0_i32 = arith.constant 0 : i32
    %c0_i32_0 = arith.constant 0 : i32
    %c0_i32_1 = arith.constant 0 : i32
    return %arg0, %c0_i32, %c0_i32_0 : i32, i32, i32
  }
}

module attributes {stable_mosaic.version = 11 : i64} {
  func.func @_tail_kernel(%arg0: i32, %arg1: memref<72x128xbf16, #tpu.memory_space<vmem>>, %arg2: memref<72x128xbf16, #tpu.memory_space<vmem>>, %arg3: memref<8x72xf32, #tpu.memory_space<vmem>>, %arg4: memref<8x72xf32, #tpu.memory_space<vmem>>, %arg5: memref<8x1xf32, #tpu.memory_space<vmem>>, %arg6: memref<8x8xf32, #tpu.memory_space<vmem>>, %arg7: memref<8x1xf32, #tpu.memory_space<vmem>>, %arg8: memref<8x128xbf16, #tpu.memory_space<vmem>>) attributes {dimension_semantics = [#tpu.dimension_semantics<parallel>], iteration_bounds = array<i64: 1>, scalar_prefetch = 0 : i64, scratch_operands = 0 : i64, tpu.core_type = #tpu.core_type<tc>, window_params = [{transform_indices = @transform_0, window_bounds = array<i64: 72, 128>}, {transform_indices = @transform_1, window_bounds = array<i64: 72, 128>}, {pipeline_mode = #tpu.pipeline_mode<synchronous>, transform_indices = @transform_2, window_bounds = array<i64: 8, 72>}, {pipeline_mode = #tpu.pipeline_mode<synchronous>, transform_indices = @transform_3, window_bounds = array<i64: 8, 72>}, {pipeline_mode = #tpu.pipeline_mode<synchronous>, transform_indices = @transform_4, window_bounds = array<i64: 8, 1>}, {pipeline_mode = #tpu.pipeline_mode<synchronous>, transform_indices = @transform_5, window_bounds = array<i64: 8, 8>}, {pipeline_mode = #tpu.pipeline_mode<synchronous>, transform_indices = @transform_6, window_bounds = array<i64: 8, 1>}, {transform_indices = @transform_7, window_bounds = array<i64: 8, 128>}]} {
    %c0 = arith.constant 0 : index
    %c0_0 = arith.constant 0 : index
    %0 = vector.load %arg1[%c0, %c0_0] : memref<72x128xbf16, #tpu.memory_space<vmem>>, vector<72x128xbf16>
    %1 = arith.extf %0 : vector<72x128xbf16> to vector<72x128xf32>
    %c0_1 = arith.constant 0 : index
    %c0_2 = arith.constant 0 : index
    %2 = vector.load %arg2[%c0_1, %c0_2] : memref<72x128xbf16, #tpu.memory_space<vmem>>, vector<72x128xbf16>
    %3 = arith.extf %2 : vector<72x128xbf16> to vector<72x128xf32>
    %c0_3 = arith.constant 0 : index
    %c0_4 = arith.constant 0 : index
    %4 = vector.load %arg3[%c0_3, %c0_4] : memref<8x72xf32, #tpu.memory_space<vmem>>, vector<8x72xf32>
    %cst = arith.constant dense<0.000000e+00> : vector<8x128xf32>
    %5 = tpu.matmul %4, %1, %cst {dimension_numbers = #tpu.dot_dimension_numbers<[1], [0], [0], [1], [0, 0, 1, 1], [], []>} : vector<8x72xf32>, vector<72x128xf32>, vector<8x128xf32> -> vector<8x128xf32>
    %c0_5 = arith.constant 0 : index
    %c0_6 = arith.constant 0 : index
    %6 = vector.load %arg4[%c0_5, %c0_6] : memref<8x72xf32, #tpu.memory_space<vmem>>, vector<8x72xf32>
    %cst_7 = arith.constant dense<0.000000e+00> : vector<8x128xf32>
    %7 = tpu.matmul %6, %3, %cst_7 {dimension_numbers = #tpu.dot_dimension_numbers<[1], [0], [0], [1], [0, 0, 1, 1], [], []>} : vector<8x72xf32>, vector<72x128xf32>, vector<8x128xf32> -> vector<8x128xf32>
    %8 = arith.addf %5, %7 : vector<8x128xf32>
    %c0_8 = arith.constant 0 : index
    %c0_9 = arith.constant 0 : index
    %9 = vector.load %arg5[%c0_8, %c0_9] : memref<8x1xf32, #tpu.memory_space<vmem>>, vector<8x1xf32>
    %10 = vector.broadcast %9 : vector<8x1xf32> to vector<8x128xf32>
    %11 = arith.addf %8, %10 : vector<8x128xf32>
    %cst_10 = arith.constant 0.000000e+00 : f32
    %12 = vector.broadcast %cst_10 : f32 to vector<8x128xf32>
    %13 = arith.cmpf oge, %11, %12 : vector<8x128xf32>
    %cst_11 = arith.constant 2.000000e-01 : f32
    %14 = vector.broadcast %cst_11 : f32 to vector<8x128xf32>
    %15 = arith.mulf %14, %11 : vector<8x128xf32>
    %16 = arith.select %13, %11, %15 : vector<8x128xi1>, vector<8x128xf32>
    %c0_12 = arith.constant 0 : index
    %c0_13 = arith.constant 0 : index
    %17 = vector.load %arg6[%c0_12, %c0_13] : memref<8x8xf32, #tpu.memory_space<vmem>>, vector<8x8xf32>
    %cst_14 = arith.constant dense<0.000000e+00> : vector<8x128xf32>
    %18 = tpu.matmul %17, %16, %cst_14 {dimension_numbers = #tpu.dot_dimension_numbers<[1], [0], [0], [1], [0, 0, 1, 1], [], []>} : vector<8x8xf32>, vector<8x128xf32>, vector<8x128xf32> -> vector<8x128xf32>
    %c0_15 = arith.constant 0 : index
    %c0_16 = arith.constant 0 : index
    %19 = vector.load %arg7[%c0_15, %c0_16] : memref<8x1xf32, #tpu.memory_space<vmem>>, vector<8x1xf32>
    %20 = vector.broadcast %19 : vector<8x1xf32> to vector<8x128xf32>
    %21 = arith.addf %18, %20 : vector<8x128xf32>
    %cst_17 = arith.constant 0.000000e+00 : f32
    %22 = vector.broadcast %cst_17 : f32 to vector<8x128xf32>
    %23 = arith.cmpf oge, %21, %22 : vector<8x128xf32>
    %cst_18 = arith.constant 2.000000e-01 : f32
    %24 = vector.broadcast %cst_18 : f32 to vector<8x128xf32>
    %25 = arith.mulf %24, %21 : vector<8x128xf32>
    %26 = arith.select %23, %21, %25 : vector<8x128xi1>, vector<8x128xf32>
    %27 = arith.truncf %26 : vector<8x128xf32> to vector<8x128xbf16>
    %c0_19 = arith.constant 0 : index
    %c0_20 = arith.constant 0 : index
    %28 = vector.load %arg8[%c0_19, %c0_20] : memref<8x128xbf16, #tpu.memory_space<vmem>>, vector<8x128xbf16>
    tpu.vector_store %arg8[%c0_19, %c0_20], %27 {strides = array<i32>} : memref<8x128xbf16, #tpu.memory_space<vmem>>, vector<8x128xbf16>,
    return
  }
  func.func @transform_0(%arg0: i32) -> (i32, i32) {
    %c0_i32 = arith.constant 0 : i32
    %c0_i32_0 = arith.constant 0 : i32
    return %c0_i32, %arg0 : i32, i32
  }
  func.func @transform_1(%arg0: i32) -> (i32, i32) {
    %c0_i32 = arith.constant 0 : i32
    %c0_i32_0 = arith.constant 0 : i32
    return %c0_i32, %arg0 : i32, i32
  }
  func.func @transform_2(%arg0: i32) -> (i32, i32) {
    %c0_i32 = arith.constant 0 : i32
    %c0_i32_0 = arith.constant 0 : i32
    %c0_i32_1 = arith.constant 0 : i32
    return %c0_i32, %c0_i32_0 : i32, i32
  }
  func.func @transform_3(%arg0: i32) -> (i32, i32) {
    %c0_i32 = arith.constant 0 : i32
    %c0_i32_0 = arith.constant 0 : i32
    %c0_i32_1 = arith.constant 0 : i32
    return %c0_i32, %c0_i32_0 : i32, i32
  }
  func.func @transform_4(%arg0: i32) -> (i32, i32) {
    %c0_i32 = arith.constant 0 : i32
    %c0_i32_0 = arith.constant 0 : i32
    %c0_i32_1 = arith.constant 0 : i32
    return %c0_i32, %c0_i32_0 : i32, i32
  }
  func.func @transform_5(%arg0: i32) -> (i32, i32) {
    %c0_i32 = arith.constant 0 : i32
    %c0_i32_0 = arith.constant 0 : i32
    %c0_i32_1 = arith.constant 0 : i32
    return %c0_i32, %c0_i32_0 : i32, i32
  }
  func.func @transform_6(%arg0: i32) -> (i32, i32) {
    %c0_i32 = arith.constant 0 : i32
    %c0_i32_0 = arith.constant 0 : i32
    %c0_i32_1 = arith.constant 0 : i32
    return %c0_i32, %c0_i32_0 : i32, i32
  }
  func.func @transform_7(%arg0: i32) -> (i32, i32) {
    %c0_i32 = arith.constant 0 : i32
    %c0_i32_0 = arith.constant 0 : i32
    return %c0_i32, %arg0 : i32, i32
  }
}

module attributes {stable_mosaic.version = 11 : i64} {
  func.func @_bilinear_up_kernel(%arg0: i32, %arg1: memref<1x4x4xbf16, #tpu.memory_space<vmem>>, %arg2: memref<8x4xf32, #tpu.memory_space<vmem>>, %arg3: memref<4x8xf32, #tpu.memory_space<vmem>>, %arg4: memref<1x8x8xbf16, #tpu.memory_space<vmem>>) attributes {dimension_semantics = [#tpu.dimension_semantics<parallel>], iteration_bounds = array<i64: 16>, scalar_prefetch = 0 : i64, scratch_operands = 0 : i64, tpu.core_type = #tpu.core_type<tc>, window_params = [{transform_indices = @transform_0, window_bounds = array<i64: 1, 4, 4>}, {pipeline_mode = #tpu.pipeline_mode<synchronous>, transform_indices = @transform_1, window_bounds = array<i64: 8, 4>}, {pipeline_mode = #tpu.pipeline_mode<synchronous>, transform_indices = @transform_2, window_bounds = array<i64: 4, 8>}, {transform_indices = @transform_3, window_bounds = array<i64: 1, 8, 8>}]} {
    %c0 = arith.constant 0 : index
    %c0_0 = arith.constant 0 : index
    %c0_1 = arith.constant 0 : index
    %0 = vector.load %arg1[%c0, %c0_0, %c0_1] : memref<1x4x4xbf16, #tpu.memory_space<vmem>>, vector<1x4x4xbf16>
    %1 = vector.shape_cast %0 : vector<1x4x4xbf16> to vector<4x4xbf16>
    %2 = arith.extf %1 : vector<4x4xbf16> to vector<4x4xf32>
    %c0_2 = arith.constant 0 : index
    %c0_3 = arith.constant 0 : index
    %3 = vector.load %arg2[%c0_2, %c0_3] : memref<8x4xf32, #tpu.memory_space<vmem>>, vector<8x4xf32>
    %cst = arith.constant dense<0.000000e+00> : vector<8x4xf32>
    %4 = tpu.matmul %3, %2, %cst {dimension_numbers = #tpu.dot_dimension_numbers<[1], [0], [0], [1], [0, 0, 1, 1], [], []>} : vector<8x4xf32>, vector<4x4xf32>, vector<8x4xf32> -> vector<8x4xf32>
    %c0_4 = arith.constant 0 : index
    %c0_5 = arith.constant 0 : index
    %5 = vector.load %arg3[%c0_4, %c0_5] : memref<4x8xf32, #tpu.memory_space<vmem>>, vector<4x8xf32>
    %cst_6 = arith.constant dense<0.000000e+00> : vector<8x8xf32>
    %6 = tpu.matmul %4, %5, %cst_6 {dimension_numbers = #tpu.dot_dimension_numbers<[1], [0], [0], [1], [0, 0, 1, 1], [], []>} : vector<8x4xf32>, vector<4x8xf32>, vector<8x8xf32> -> vector<8x8xf32>
    %7 = arith.truncf %6 : vector<8x8xf32> to vector<8x8xbf16>
    %c0_7 = arith.constant 0 : index
    %c0_8 = arith.constant 0 : index
    %c0_9 = arith.constant 0 : index
    %8 = vector.load %arg4[%c0_7, %c0_8, %c0_9] : memref<1x8x8xbf16, #tpu.memory_space<vmem>>, vector<1x8x8xbf16>
    %9 = vector.shape_cast %8 : vector<1x8x8xbf16> to vector<8x8xbf16>
    %10 = vector.shape_cast %7 : vector<8x8xbf16> to vector<1x8x8xbf16>
    tpu.vector_store %arg4[%c0_7, %c0_8, %c0_9], %10 {strides = array<i32>} : memref<1x8x8xbf16, #tpu.memory_space<vmem>>, vector<1x8x8xbf16>,
    return
  }
  func.func @transform_0(%arg0: i32) -> (i32, i32, i32) {
    %c0_i32 = arith.constant 0 : i32
    %c0_i32_0 = arith.constant 0 : i32
    %c0_i32_1 = arith.constant 0 : i32
    return %arg0, %c0_i32, %c0_i32_0 : i32, i32, i32
  }
  func.func @transform_1(%arg0: i32) -> (i32, i32) {
    %c0_i32 = arith.constant 0 : i32
    %c0_i32_0 = arith.constant 0 : i32
    %c0_i32_1 = arith.constant 0 : i32
    return %c0_i32, %c0_i32_0 : i32, i32
  }
  func.func @transform_2(%arg0: i32) -> (i32, i32) {
    %c0_i32 = arith.constant 0 : i32
    %c0_i32_0 = arith.constant 0 : i32
    %c0_i32_1 = arith.constant 0 : i32
    return %c0_i32, %c0_i32_0 : i32, i32
  }
  func.func @transform_3(%arg0: i32) -> (i32, i32, i32) {
    %c0_i32 = arith.constant 0 : i32
    %c0_i32_0 = arith.constant 0 : i32
    %c0_i32_1 = arith.constant 0 : i32
    return %arg0, %c0_i32, %c0_i32_0 : i32, i32, i32
  }
}

module attributes {stable_mosaic.version = 11 : i64} {
  func.func @_bilinear_up_kernel(%arg0: i32, %arg1: memref<1x8x8xbf16, #tpu.memory_space<vmem>>, %arg2: memref<16x8xf32, #tpu.memory_space<vmem>>, %arg3: memref<8x16xf32, #tpu.memory_space<vmem>>, %arg4: memref<1x16x16xbf16, #tpu.memory_space<vmem>>) attributes {dimension_semantics = [#tpu.dimension_semantics<parallel>], iteration_bounds = array<i64: 16>, scalar_prefetch = 0 : i64, scratch_operands = 0 : i64, tpu.core_type = #tpu.core_type<tc>, window_params = [{transform_indices = @transform_0, window_bounds = array<i64: 1, 8, 8>}, {pipeline_mode = #tpu.pipeline_mode<synchronous>, transform_indices = @transform_1, window_bounds = array<i64: 16, 8>}, {pipeline_mode = #tpu.pipeline_mode<synchronous>, transform_indices = @transform_2, window_bounds = array<i64: 8, 16>}, {transform_indices = @transform_3, window_bounds = array<i64: 1, 16, 16>}]} {
    %c0 = arith.constant 0 : index
    %c0_0 = arith.constant 0 : index
    %c0_1 = arith.constant 0 : index
    %0 = vector.load %arg1[%c0, %c0_0, %c0_1] : memref<1x8x8xbf16, #tpu.memory_space<vmem>>, vector<1x8x8xbf16>
    %1 = vector.shape_cast %0 : vector<1x8x8xbf16> to vector<8x8xbf16>
    %2 = arith.extf %1 : vector<8x8xbf16> to vector<8x8xf32>
    %c0_2 = arith.constant 0 : index
    %c0_3 = arith.constant 0 : index
    %3 = vector.load %arg2[%c0_2, %c0_3] : memref<16x8xf32, #tpu.memory_space<vmem>>, vector<16x8xf32>
    %cst = arith.constant dense<0.000000e+00> : vector<16x8xf32>
    %4 = tpu.matmul %3, %2, %cst {dimension_numbers = #tpu.dot_dimension_numbers<[1], [0], [0], [1], [0, 0, 1, 1], [], []>} : vector<16x8xf32>, vector<8x8xf32>, vector<16x8xf32> -> vector<16x8xf32>
    %c0_4 = arith.constant 0 : index
    %c0_5 = arith.constant 0 : index
    %5 = vector.load %arg3[%c0_4, %c0_5] : memref<8x16xf32, #tpu.memory_space<vmem>>, vector<8x16xf32>
    %cst_6 = arith.constant dense<0.000000e+00> : vector<16x16xf32>
    %6 = tpu.matmul %4, %5, %cst_6 {dimension_numbers = #tpu.dot_dimension_numbers<[1], [0], [0], [1], [0, 0, 1, 1], [], []>} : vector<16x8xf32>, vector<8x16xf32>, vector<16x16xf32> -> vector<16x16xf32>
    %7 = arith.truncf %6 : vector<16x16xf32> to vector<16x16xbf16>
    %c0_7 = arith.constant 0 : index
    %c0_8 = arith.constant 0 : index
    %c0_9 = arith.constant 0 : index
    %8 = vector.load %arg4[%c0_7, %c0_8, %c0_9] : memref<1x16x16xbf16, #tpu.memory_space<vmem>>, vector<1x16x16xbf16>
    %9 = vector.shape_cast %8 : vector<1x16x16xbf16> to vector<16x16xbf16>
    %10 = vector.shape_cast %7 : vector<16x16xbf16> to vector<1x16x16xbf16>
    tpu.vector_store %arg4[%c0_7, %c0_8, %c0_9], %10 {strides = array<i32>} : memref<1x16x16xbf16, #tpu.memory_space<vmem>>, vector<1x16x16xbf16>,
    return
  }
  func.func @transform_0(%arg0: i32) -> (i32, i32, i32) {
    %c0_i32 = arith.constant 0 : i32
    %c0_i32_0 = arith.constant 0 : i32
    %c0_i32_1 = arith.constant 0 : i32
    return %arg0, %c0_i32, %c0_i32_0 : i32, i32, i32
  }
  func.func @transform_1(%arg0: i32) -> (i32, i32) {
    %c0_i32 = arith.constant 0 : i32
    %c0_i32_0 = arith.constant 0 : i32
    %c0_i32_1 = arith.constant 0 : i32
    return %c0_i32, %c0_i32_0 : i32, i32
  }
  func.func @transform_2(%arg0: i32) -> (i32, i32) {
    %c0_i32 = arith.constant 0 : i32
    %c0_i32_0 = arith.constant 0 : i32
    %c0_i32_1 = arith.constant 0 : i32
    return %c0_i32, %c0_i32_0 : i32, i32
  }
  func.func @transform_3(%arg0: i32) -> (i32, i32, i32) {
    %c0_i32 = arith.constant 0 : i32
    %c0_i32_0 = arith.constant 0 : i32
    %c0_i32_1 = arith.constant 0 : i32
    return %arg0, %c0_i32, %c0_i32_0 : i32, i32, i32
  }
}

module attributes {stable_mosaic.version = 11 : i64} {
  func.func @_conv_kernel(%arg0: i32, %arg1: memref<8x512xbf16, #tpu.memory_space<vmem>>, %arg2: memref<8x8xf32, #tpu.memory_space<vmem>>, %arg3: memref<8x1xf32, #tpu.memory_space<vmem>>, %arg4: memref<8x512xf32, #tpu.memory_space<vmem>>) attributes {dimension_semantics = [#tpu.dimension_semantics<parallel>], iteration_bounds = array<i64: 1>, scalar_prefetch = 0 : i64, scratch_operands = 0 : i64, tpu.core_type = #tpu.core_type<tc>, window_params = [{transform_indices = @transform_0, window_bounds = array<i64: 8, 512>}, {pipeline_mode = #tpu.pipeline_mode<synchronous>, transform_indices = @transform_1, window_bounds = array<i64: 8, 8>}, {pipeline_mode = #tpu.pipeline_mode<synchronous>, transform_indices = @transform_2, window_bounds = array<i64: 8, 1>}, {transform_indices = @transform_3, window_bounds = array<i64: 8, 512>}]} {
    %c0 = arith.constant 0 : index
    %c0_0 = arith.constant 0 : index
    %0 = vector.load %arg1[%c0, %c0_0] : memref<8x512xbf16, #tpu.memory_space<vmem>>, vector<8x512xbf16>
    %1 = arith.extf %0 : vector<8x512xbf16> to vector<8x512xf32>
    %c0_1 = arith.constant 0 : index
    %c0_2 = arith.constant 0 : index
    %2 = vector.load %arg2[%c0_1, %c0_2] : memref<8x8xf32, #tpu.memory_space<vmem>>, vector<8x8xf32>
    %cst = arith.constant dense<0.000000e+00> : vector<8x512xf32>
    %3 = tpu.matmul %2, %1, %cst {dimension_numbers = #tpu.dot_dimension_numbers<[1], [0], [0], [1], [0, 0, 1, 1], [], []>} : vector<8x8xf32>, vector<8x512xf32>, vector<8x512xf32> -> vector<8x512xf32>
    %c0_3 = arith.constant 0 : index
    %c0_4 = arith.constant 0 : index
    %4 = vector.load %arg3[%c0_3, %c0_4] : memref<8x1xf32, #tpu.memory_space<vmem>>, vector<8x1xf32>
    %5 = vector.broadcast %4 : vector<8x1xf32> to vector<8x512xf32>
    %6 = arith.addf %3, %5 : vector<8x512xf32>
    %cst_5 = arith.constant 0.000000e+00 : f32
    %7 = vector.broadcast %cst_5 : f32 to vector<8x512xf32>
    %8 = arith.subf %7, %6 : vector<8x512xf32>
    %9 = math.exp %8 : vector<8x512xf32>
    %cst_6 = arith.constant 1.000000e+00 : f32
    %10 = vector.broadcast %cst_6 : f32 to vector<8x512xf32>
    %11 = arith.addf %10, %9 : vector<8x512xf32>
    %cst_7 = arith.constant 1.000000e+00 : f32
    %12 = vector.broadcast %cst_7 : f32 to vector<8x512xf32>
    %13 = arith.divf %12, %11 : vector<8x512xf32>
    %c0_8 = arith.constant 0 : index
    %c0_9 = arith.constant 0 : index
    %14 = vector.load %arg4[%c0_8, %c0_9] : memref<8x512xf32, #tpu.memory_space<vmem>>, vector<8x512xf32>
    tpu.vector_store %arg4[%c0_8, %c0_9], %13 {strides = array<i32>} : memref<8x512xf32, #tpu.memory_space<vmem>>, vector<8x512xf32>,
    return
  }
  func.func @transform_0(%arg0: i32) -> (i32, i32) {
    %c0_i32 = arith.constant 0 : i32
    %c0_i32_0 = arith.constant 0 : i32
    return %c0_i32, %arg0 : i32, i32
  }
  func.func @transform_1(%arg0: i32) -> (i32, i32) {
    %c0_i32 = arith.constant 0 : i32
    %c0_i32_0 = arith.constant 0 : i32
    %c0_i32_1 = arith.constant 0 : i32
    return %c0_i32, %c0_i32_0 : i32, i32
  }
  func.func @transform_2(%arg0: i32) -> (i32, i32) {
    %c0_i32 = arith.constant 0 : i32
    %c0_i32_0 = arith.constant 0 : i32
    %c0_i32_1 = arith.constant 0 : i32
    return %c0_i32, %c0_i32_0 : i32, i32
  }
  func.func @transform_3(%arg0: i32) -> (i32, i32) {
    %c0_i32 = arith.constant 0 : i32
    %c0_i32_0 = arith.constant 0 : i32
    return %c0_i32, %arg0 : i32, i32
  }
}

module attributes {stable_mosaic.version = 11 : i64} {
  func.func @_tail_kernel(%arg0: i32, %arg1: memref<72x512xbf16, #tpu.memory_space<vmem>>, %arg2: memref<72x512xbf16, #tpu.memory_space<vmem>>, %arg3: memref<8x72xf32, #tpu.memory_space<vmem>>, %arg4: memref<8x72xf32, #tpu.memory_space<vmem>>, %arg5: memref<8x1xf32, #tpu.memory_space<vmem>>, %arg6: memref<8x8xf32, #tpu.memory_space<vmem>>, %arg7: memref<8x1xf32, #tpu.memory_space<vmem>>, %arg8: memref<8x512xbf16, #tpu.memory_space<vmem>>) attributes {dimension_semantics = [#tpu.dimension_semantics<parallel>], iteration_bounds = array<i64: 1>, scalar_prefetch = 0 : i64, scratch_operands = 0 : i64, tpu.core_type = #tpu.core_type<tc>, window_params = [{transform_indices = @transform_0, window_bounds = array<i64: 72, 512>}, {transform_indices = @transform_1, window_bounds = array<i64: 72, 512>}, {pipeline_mode = #tpu.pipeline_mode<synchronous>, transform_indices = @transform_2, window_bounds = array<i64: 8, 72>}, {pipeline_mode = #tpu.pipeline_mode<synchronous>, transform_indices = @transform_3, window_bounds = array<i64: 8, 72>}, {pipeline_mode = #tpu.pipeline_mode<synchronous>, transform_indices = @transform_4, window_bounds = array<i64: 8, 1>}, {pipeline_mode = #tpu.pipeline_mode<synchronous>, transform_indices = @transform_5, window_bounds = array<i64: 8, 8>}, {pipeline_mode = #tpu.pipeline_mode<synchronous>, transform_indices = @transform_6, window_bounds = array<i64: 8, 1>}, {transform_indices = @transform_7, window_bounds = array<i64: 8, 512>}]} {
    %c0 = arith.constant 0 : index
    %c0_0 = arith.constant 0 : index
    %0 = vector.load %arg1[%c0, %c0_0] : memref<72x512xbf16, #tpu.memory_space<vmem>>, vector<72x512xbf16>
    %1 = arith.extf %0 : vector<72x512xbf16> to vector<72x512xf32>
    %c0_1 = arith.constant 0 : index
    %c0_2 = arith.constant 0 : index
    %2 = vector.load %arg2[%c0_1, %c0_2] : memref<72x512xbf16, #tpu.memory_space<vmem>>, vector<72x512xbf16>
    %3 = arith.extf %2 : vector<72x512xbf16> to vector<72x512xf32>
    %c0_3 = arith.constant 0 : index
    %c0_4 = arith.constant 0 : index
    %4 = vector.load %arg3[%c0_3, %c0_4] : memref<8x72xf32, #tpu.memory_space<vmem>>, vector<8x72xf32>
    %cst = arith.constant dense<0.000000e+00> : vector<8x512xf32>
    %5 = tpu.matmul %4, %1, %cst {dimension_numbers = #tpu.dot_dimension_numbers<[1], [0], [0], [1], [0, 0, 1, 1], [], []>} : vector<8x72xf32>, vector<72x512xf32>, vector<8x512xf32> -> vector<8x512xf32>
    %c0_5 = arith.constant 0 : index
    %c0_6 = arith.constant 0 : index
    %6 = vector.load %arg4[%c0_5, %c0_6] : memref<8x72xf32, #tpu.memory_space<vmem>>, vector<8x72xf32>
    %cst_7 = arith.constant dense<0.000000e+00> : vector<8x512xf32>
    %7 = tpu.matmul %6, %3, %cst_7 {dimension_numbers = #tpu.dot_dimension_numbers<[1], [0], [0], [1], [0, 0, 1, 1], [], []>} : vector<8x72xf32>, vector<72x512xf32>, vector<8x512xf32> -> vector<8x512xf32>
    %8 = arith.addf %5, %7 : vector<8x512xf32>
    %c0_8 = arith.constant 0 : index
    %c0_9 = arith.constant 0 : index
    %9 = vector.load %arg5[%c0_8, %c0_9] : memref<8x1xf32, #tpu.memory_space<vmem>>, vector<8x1xf32>
    %10 = vector.broadcast %9 : vector<8x1xf32> to vector<8x512xf32>
    %11 = arith.addf %8, %10 : vector<8x512xf32>
    %cst_10 = arith.constant 0.000000e+00 : f32
    %12 = vector.broadcast %cst_10 : f32 to vector<8x512xf32>
    %13 = arith.cmpf oge, %11, %12 : vector<8x512xf32>
    %cst_11 = arith.constant 2.000000e-01 : f32
    %14 = vector.broadcast %cst_11 : f32 to vector<8x512xf32>
    %15 = arith.mulf %14, %11 : vector<8x512xf32>
    %16 = arith.select %13, %11, %15 : vector<8x512xi1>, vector<8x512xf32>
    %c0_12 = arith.constant 0 : index
    %c0_13 = arith.constant 0 : index
    %17 = vector.load %arg6[%c0_12, %c0_13] : memref<8x8xf32, #tpu.memory_space<vmem>>, vector<8x8xf32>
    %cst_14 = arith.constant dense<0.000000e+00> : vector<8x512xf32>
    %18 = tpu.matmul %17, %16, %cst_14 {dimension_numbers = #tpu.dot_dimension_numbers<[1], [0], [0], [1], [0, 0, 1, 1], [], []>} : vector<8x8xf32>, vector<8x512xf32>, vector<8x512xf32> -> vector<8x512xf32>
    %c0_15 = arith.constant 0 : index
    %c0_16 = arith.constant 0 : index
    %19 = vector.load %arg7[%c0_15, %c0_16] : memref<8x1xf32, #tpu.memory_space<vmem>>, vector<8x1xf32>
    %20 = vector.broadcast %19 : vector<8x1xf32> to vector<8x512xf32>
    %21 = arith.addf %18, %20 : vector<8x512xf32>
    %cst_17 = arith.constant 0.000000e+00 : f32
    %22 = vector.broadcast %cst_17 : f32 to vector<8x512xf32>
    %23 = arith.cmpf oge, %21, %22 : vector<8x512xf32>
    %cst_18 = arith.constant 2.000000e-01 : f32
    %24 = vector.broadcast %cst_18 : f32 to vector<8x512xf32>
    %25 = arith.mulf %24, %21 : vector<8x512xf32>
    %26 = arith.select %23, %21, %25 : vector<8x512xi1>, vector<8x512xf32>
    %27 = arith.truncf %26 : vector<8x512xf32> to vector<8x512xbf16>
    %c0_19 = arith.constant 0 : index
    %c0_20 = arith.constant 0 : index
    %28 = vector.load %arg8[%c0_19, %c0_20] : memref<8x512xbf16, #tpu.memory_space<vmem>>, vector<8x512xbf16>
    tpu.vector_store %arg8[%c0_19, %c0_20], %27 {strides = array<i32>} : memref<8x512xbf16, #tpu.memory_space<vmem>>, vector<8x512xbf16>,
    return
  }
  func.func @transform_0(%arg0: i32) -> (i32, i32) {
    %c0_i32 = arith.constant 0 : i32
    %c0_i32_0 = arith.constant 0 : i32
    return %c0_i32, %arg0 : i32, i32
  }
  func.func @transform_1(%arg0: i32) -> (i32, i32) {
    %c0_i32 = arith.constant 0 : i32
    %c0_i32_0 = arith.constant 0 : i32
    return %c0_i32, %arg0 : i32, i32
  }
  func.func @transform_2(%arg0: i32) -> (i32, i32) {
    %c0_i32 = arith.constant 0 : i32
    %c0_i32_0 = arith.constant 0 : i32
    %c0_i32_1 = arith.constant 0 : i32
    return %c0_i32, %c0_i32_0 : i32, i32
  }
  func.func @transform_3(%arg0: i32) -> (i32, i32) {
    %c0_i32 = arith.constant 0 : i32
    %c0_i32_0 = arith.constant 0 : i32
    %c0_i32_1 = arith.constant 0 : i32
    return %c0_i32, %c0_i32_0 : i32, i32
  }
  func.func @transform_4(%arg0: i32) -> (i32, i32) {
    %c0_i32 = arith.constant 0 : i32
    %c0_i32_0 = arith.constant 0 : i32
    %c0_i32_1 = arith.constant 0 : i32
    return %c0_i32, %c0_i32_0 : i32, i32
  }
  func.func @transform_5(%arg0: i32) -> (i32, i32) {
    %c0_i32 = arith.constant 0 : i32
    %c0_i32_0 = arith.constant 0 : i32
    %c0_i32_1 = arith.constant 0 : i32
    return %c0_i32, %c0_i32_0 : i32, i32
  }
  func.func @transform_6(%arg0: i32) -> (i32, i32) {
    %c0_i32 = arith.constant 0 : i32
    %c0_i32_0 = arith.constant 0 : i32
    %c0_i32_1 = arith.constant 0 : i32
    return %c0_i32, %c0_i32_0 : i32, i32
  }
  func.func @transform_7(%arg0: i32) -> (i32, i32) {
    %c0_i32 = arith.constant 0 : i32
    %c0_i32_0 = arith.constant 0 : i32
    return %c0_i32, %arg0 : i32, i32
  }
}

</mosaic_0001>

<bundles_post_ra>
// kernel: skip_adadrop_forward.16
= control target key start
LH: loop header
LB: loop body
LE: loop exit
PB: predicated region body
PF: predicated region fallthrough
CT: control target
= control target key end

     0   :  { %v216_v2 = vmov 0.0   ;;  %v217_v7 = vmov 0   ;;  %vm27_vm0 = vcmask 64512   ;;  %s256_s0 = inlined_call_operand.vmem [shape: bf16[8,512], index: 0, kind: input, shape index: {}]   ;;  %s257_s1 = inlined_call_operand.vmem [shape: f32[8,8], index: 1, kind: input, shape index: {}]   ;;  %s258_s2 = inlined_call_operand.vmem [shape: f32[8,1], index: 2, kind: input, shape index: {}]   ;;  %s259_s3 = inlined_call_operand.vmem [shape: bf16[8,512], index: 3, kind: output, shape index: {}]  }
   0x1   :  { %v14_v0 = vld [vmem:[%s256_s0] sm:$0xff]  ;;  %v15_v1 = vld [vmem:[%s256_s0 + $0x8] sm:$0xff]  ;;  %95 = vmatprep.mubr.f32.mxu0 %v216_v2  ;;  %166 = vmatprep.mubr.f32.mxu1 %v216_v2 }
   0x2   :  { %v17_v3 = vunpack.c.h.bf16 %v14_v0  ;;  %v19_v4 = vunpack.c.h.bf16 %v15_v1  ;;  %v16_v5 = vunpack.c.l.bf16 %v14_v0  ;;  %v18_v6 = vunpack.c.l.bf16 %v15_v1  ;;  %215 = vset.pattern.permute.xlu0 %v217_v7  ;;  %v21_v8 = vld [vmem:[%s258_s2] sm:$0xff] }
   0x3   :  { %v20_v9 = vld [vmem:[%s257_s1] sm:$0xff]  ;;  %24 = vperm.xlu0 %215, %v21_v8  }
   0x4   :  { %31 = vmatprep.subr.mxu0 %v17_v3  ;;  %102 = vmatprep.subr.mxu1 %v19_v4 }
   0x5   :  { %32 = vmatpush1.msra.mxu0 %v16_v5  ;;  %103 = vmatpush1.msra.mxu1 %v18_v6 }
   0x6   :  { %207 = vmatmul.mubr.msk.f32.vlgmr.msra.gmra.mrb[0].mxu0 %vm27_vm0, %v20_v9  ;;  %208 = vmatmul.mubr.msk.f32.vlgmr.msra.gmra.mrb[0].mxu1 %vm27_vm0, %v20_v9 }
  0x82   :  { %v25_v10 = vpop.permute.xlu0 %24 }
  0xd9   :  { %v97_v11 = vpop.f32.mrb[0].mxu0  ;;  %v168_v12 = vpop.f32.mrb[0].mxu1 }
  0xda   :  { %v98_v13 = vadd.f32 %v97_v11, %v25_v10  ;;  %v169_v14 = vadd.f32 %v168_v12, %v25_v10  ;;  %v99_v15 = vpop.f32.mrb[1].mxu0  ;;  %v170_v16 = vpop.f32.mrb[1].mxu1 }
  0xdb   :  { %v100_v17 = vadd.f32 %v99_v15, %v25_v10  ;;  %v171_v18 = vadd.f32 %v170_v16, %v25_v10 }
  0xdc   :  { %vm173_vm1 = vcmp.ge.f32.partialorder %v98_v13, 0.0  ;;  %v177_v19 = vmul.f32 0.2, %v98_v13  ;;  %vm175_vm2 = vcmp.ge.f32.partialorder %v169_v14, 0.0  ;;  %v179_v20 = vmul.f32 0.2, %v169_v14 }
  0xdd   :  { %vm174_vm3 = vcmp.ge.f32.partialorder %v100_v17, 0.0  ;;  %v178_v21 = vmul.f32 0.2, %v100_v17  ;;  %vm176_vm4 = vcmp.ge.f32.partialorder %v171_v18, 0.0  ;;  %v180_v22 = vmul.f32 0.2, %v171_v18 }
  0xde   :  { %v181_v23 = vsel %vm173_vm1, %v98_v13, %v177_v19  ;;  %v183_v24 = vsel %vm175_vm2, %v169_v14, %v179_v20 }
  0xdf   :  { %v182_v25 = vsel %vm174_vm3, %v100_v17, %v178_v21  ;;  %v184_v26 = vsel %vm176_vm4, %v171_v18, %v180_v22 }
  0xe0   :  { %v211_v27 = vpack.c.bf16 %v182_v25, %v181_v23  ;;  %v212_v28 = vpack.c.bf16 %v184_v26, %v183_v24 }
  0xe2   :  { %201 = vst [vmem:[%s259_s3] sm:$0xff] %v211_v27  ;;  %202 = vst [vmem:[%s259_s3 + $0x8] sm:$0xff] %v212_v28 }

// kernel: skip_adadrop_forward.17
= control target key start
LH: loop header
LB: loop body
LE: loop exit
PB: predicated region body
PF: predicated region fallthrough
CT: control target
= control target key end

     0   :  { %v190_v0 = vmov 0.0|0.0   ;;  %vm191_vm0 = vmmov 0   ;;  %v192_v2 = vmov 0.0   ;;  %v193_v3 = vmov 0   ;;  %s238_s0 = inlined_call_operand.vmem [shape: bf16[72,128], index: 0, kind: input, shape index: {}]   ;;  %s239_s2 = inlined_call_operand.vmem [shape: f32[8,1], index: 2, kind: input, shape index: {}]   ;;  %s240_s1 = inlined_call_operand.vmem [shape: f32[8,72], index: 1, kind: input, shape index: {}]   ;;  %s241_s3 = inlined_call_operand.vmem [shape: bf16[8,128], index: 3, kind: output, shape index: {}]  }
   0x1   :  { %173 = vmatprep.subr.bf16.mxu0 %v190_v0  ;;  %v124_v1 = vld [vmem:[%s238_s0] sm:$0xff]   ;;  %170 = vmatprep.mubr.msk.f32.mxu0 %vm191_vm0, %v192_v2  ;;  %v139_v4 = vld [vmem:[%s238_s0 + $0x8] sm:$0xff]   ;;  %v140_v6 = vld [vmem:[%s238_s0 + $0x10] sm:$0xff]   ;;  %vm39_vm1 = vcmask 588800  }
   0x2   :  { %175 = vmatpush3.bf16.msra.mxu0 %v124_v1  ;;  %189 = vset.pattern.permute.xlu0 %v193_v3  ;;  %v33_v5 = vld [vmem:[%s239_s2] sm:$0xff]  ;;  %v141_v7 = vld [vmem:[%s238_s0 + $0x18] sm:$0xff]  }
   0x3   :  { %176 = vmatprep.subr.bf16.mxu0 %v190_v0  ;;  %36 = vperm.xlu0 %189, %v33_v5   ;;  %v22_v8 = vld [vmem:[%s238_s0 + $0x20] sm:$0xf] }
   0x4   :  { %v31_v9 = vunpack.c.l.bf16 %v22_v8  ;;  %v32_v10 = vld [vmem:[%s240_s1] sm:$0xff] }
   0x6   :  { %178 = vmatpush3.bf16.msra.mxu0 %v139_v4 }
   0x7   :  { %179 = vmatprep.subr.bf16.mxu0 %v190_v0 }
   0xa   :  { %181 = vmatpush3.bf16.msra.mxu0 %v140_v6 }
   0xb   :  { %182 = vmatprep.subr.bf16.mxu0 %v190_v0 }
   0xe   :  { %184 = vmatpush3.bf16.msra.mxu0 %v141_v7 }
   0xf   :  { %168 = vmatprep.subr.mxu0 %v192_v2 }
  0x12   :  { %169 = vmatpush3.msra.mxu0 %v31_v9 }
  0x13   :  { %171 = vmatmul.mubr.msk.f32.vlgmr.msra.gmra.mrb[0].mxu0 %vm39_vm1, %v32_v10 }
  0x82   :  { %v37_v11 = vpop.permute.xlu0 %36 }
  0xe6   :  { %v109_v12 = vpop.f32.mrb[0].mxu0 }
  0xe7   :  { %v110_v13 = vadd.f32 %v109_v12, %v37_v11  ;;  %v172_v14 = vpop.f32.mrb[1].mxu0 }
  0xe9   :  { %vm113_vm2 = vcmp.ge.f32.partialorder %v110_v13, 0.0  ;;  %v114_v15 = vmul.f32 0.2, %v110_v13 }
  0xeb   :  { %v115_v16 = vsel %vm113_vm2, %v110_v13, %v114_v15 }
  0xec   :  { %v116_v17 = vpack.c.bf16 %v115_v16, %v115_v16 }
  0xee   :  { %117 = vst [vmem:[%s241_s3] sm:$0xf] %v116_v17 }

// kernel: skip_adadrop_forward.19
= control target key start
LH: loop header
LB: loop body
LE: loop exit
PB: predicated region body
PF: predicated region fallthrough
CT: control target
= control target key end

     0   :  { %v118_v0 = vmov 0.0   ;;  %vm119_vm0 = vmmov 0   ;;  %vm23_vm1 = vcmask 64512   ;;  %v120_v5 = vmov 0   ;;  %s153_s0 = inlined_call_operand.vmem [shape: bf16[8,128], index: 0, kind: input, shape index: {}]   ;;  %s154_s1 = inlined_call_operand.vmem [shape: f32[8,8], index: 1, kind: input, shape index: {}]   ;;  %s155_s2 = inlined_call_operand.vmem [shape: f32[8,1], index: 2, kind: input, shape index: {}]   ;;  %s156_s3 = inlined_call_operand.vmem [shape: bf16[8,128], index: 3, kind: output, shape index: {}]  }
   0x1   :  { %109 = vmatprep.subr.mxu0 %v118_v0  ;;  %v14_v1 = vld [vmem:[%s153_s0] sm:$0xf]  ;;  %111 = vmatprep.mubr.msk.f32.mxu0 %vm119_vm0, %v118_v0 }
   0x2   :  { %v17_v2 = vld [vmem:[%s155_s2] sm:$0xff]  ;;  %v15_v3 = vunpack.c.l.bf16 %v14_v1  ;;  %117 = vset.pattern.permute.xlu0 %v120_v5 }
   0x3   :  { %v16_v4 = vld [vmem:[%s154_s1] sm:$0xff]  ;;  %20 = vperm.xlu0 %117, %v17_v2  }
   0x4   :  { %110 = vmatpush3.msra.mxu0 %v15_v3 }
   0x5   :  { %112 = vmatmul.mubr.msk.f32.vlgmr.msra.gmra.mrb[0].mxu0 %vm23_vm1, %v16_v4 }
  0x82   :  { %v21_v6 = vpop.permute.xlu0 %20 }
  0xd8   :  { %v93_v7 = vpop.f32.mrb[0].mxu0 }
  0xd9   :  { %v94_v8 = vadd.f32 %v93_v7, %v21_v6  ;;  %v113_v9 = vpop.f32.mrb[1].mxu0 }
  0xdb   :  { %vm97_vm2 = vcmp.ge.f32.partialorder %v94_v8, 0.0  ;;  %v98_v10 = vmul.f32 0.2, %v94_v8 }
  0xdd   :  { %v99_v11 = vsel %vm97_vm2, %v94_v8, %v98_v10 }
  0xde   :  { %v100_v12 = vpack.c.bf16 %v99_v11, %v99_v11 }
  0xe0   :  { %101 = vst [vmem:[%s156_s3] sm:$0xf] %v100_v12 }

// kernel: skip_adadrop_forward.25
= control target key start
LH: loop header
LB: loop body
LE: loop exit
PB: predicated region body
PF: predicated region fallthrough
CT: control target
= control target key end

     0   :  { %s440_s12 = smov 0   ;;  %s463_s0 = inlined_call_operand.vmem [shape: bf16[16,2,2], index: 0, kind: input, shape index: {}]   ;;  %s464_s1 = inlined_call_operand.vmem [shape: f32[4,2], index: 1, kind: input, shape index: {}]   ;;  %s465_s2 = inlined_call_operand.vmem [shape: f32[2,4], index: 2, kind: input, shape index: {}]   ;;  %s466_s3 = inlined_call_operand.vmem [shape: bf16[16,4,4], index: 3, kind: output, shape index: {}]  }
   0x1 LB: > { %s374_s13 = sadd.s32 4294967295, %s416_s12   ;;  %p378_p0 = scmp.ge.s32.totalorder %s416_s12, 1  ;;  %s416_s12 = sphi %s440_s12, %s13_s12  }
   0x2   : > { %p135_p1 = scmp.lt.s32.totalorder %s416_s12, 17 }
   0x4   : > { %p136_p2 = pnand %p378_p0, %p135_p1 }
   0x5   : > { %p156_p3 = scmp.lt.s32.totalorder (!%p136_p2), %s374_s13, 15  ;;  %v418_v0 = vmov (!%p136_p2), 0.0   ;;  %vm419_vm0 = vmmov (!%p136_p2), 0   ;;  %vm170_vm1 = vcmask (!%p136_p2), 1041408   ;;  %v165_v3 = vld [vmem:[%s464_s1] sm:$0xf] (!%p136_p2) }
   0x6   : > { %139 = sbr.rel (%p136_p2) target bundleno = 446 (0x1be), region = 32  ;;  %390 = vmatprep.subr.mxu0 (!%p136_p2), %v418_v0  ;;  %392 = vmatprep.mubr.msk.f32.mxu0 (!%p136_p2), %vm419_vm0, %v418_v0  ;;  %vm166_vm2 = vcmask (!%p136_p2), 15360   ;;  %v244_v4 = vld [vmem:[%s465_s2] sm:$0x3] (!%p136_p2)  ;;  %vm322_vm3 = vcmask (!%p136_p2), 25600  }
   0x7   : > { %395 = vmatprep.subr.mxu1 (!%p136_p2), %v418_v0  ;;  %397 = vmatprep.mubr.msk.f32.mxu1 (!%p136_p2), %vm419_vm0, %v418_v0 }
   0x8   : > { %396 = vmatpush3.msk.msra.mxu1 (!%p136_p2), %vm170_vm1, %v244_v4 }
   0xd   : > { %s468_s13 = smov (!%p156_p3, %s374_s13), 15 }
   0xe   : > { %s158_s16 = scalar_lea.vmem %s463_s0, %s468_s13  ;;  %s379_s21 = sshll.u32 %s468_s13, 1 }
   0xf   : > { %v163_v1 = vld [vmem:[%s158_s16] sm:$0x1]  ;;  %s162_s24 = scalar_lea.vmem %s466_s3, %s379_s21 }
  0x10   : > { %v164_v2 = vunpack.c.l.bf16 %v163_v1 }
  0x12   : > { %391 = vmatpush3.msk.msra.mxu0 %vm170_vm1, %v164_v2 }
  0x13   : > { %393 = vmatmul.mubr.msk.f32.vlgmr.msra.gmra.mrb[0].mxu0 %vm166_vm2, %v165_v3 }
  0xe6   : > { %v240_v5 = vpop.f32.mrb[0].mxu0 }
  0xe7   : > { %v394_v6 = vpop.f32.mrb[1].mxu0  ;;  %398 = vmatmul.mubr.msk.f32.vlgmr.msra.gmra.mrb[0].mxu1 %vm166_vm2, %v240_v5 }
 0x1ba   : > { %v317_v7 = vpop.f32.mrb[0].mxu1 }
 0x1bb   : > { %v321_v8 = vpack.c.bf16 %v317_v7, %v317_v7  ;;  %v399_v9 = vpop.f32.mrb[1].mxu1 }
 0x1bd   : > { %323 = vst.msk [vmem:[%s162_s24] sm:$0x3] %vm322_vm3, %v321_v8 }
 0x1be PF: > { %s13_s12 = sadd.s32 1, %s416_s12  }
 0x1bf   : > { %p10_p4 = scmp.ge.s32.totalorder %s13_s12, 18  }
 0x1c1   :  { %12 = sbr.rel (!%p10_p4) target bundleno = 1 (0x1), region = 62 }

// kernel: skip_adadrop_forward.27
= control target key start
LH: loop header
LB: loop body
LE: loop exit
PB: predicated region body
PF: predicated region fallthrough
CT: control target
= control target key end

     0   :  { %s447_s12 = smov 0   ;;  %s470_s0 = inlined_call_operand.vmem [shape: bf16[16,4,4], index: 0, kind: input, shape index: {}]   ;;  %s471_s1 = inlined_call_operand.vmem [shape: f32[8,4], index: 1, kind: input, shape index: {}]   ;;  %s472_s2 = inlined_call_operand.vmem [shape: f32[4,8], index: 2, kind: input, shape index: {}]   ;;  %s473_s3 = inlined_call_operand.vmem [shape: bf16[16,8,8], index: 3, kind: output, shape index: {}]  }
   0x1 LB: > { %s380_s13 = sadd.s32 4294967295, %s423_s12   ;;  %p384_p0 = scmp.ge.s32.totalorder %s423_s12, 1  ;;  %s423_s12 = sphi %s447_s12, %s13_s12  }
   0x2   : > { %p136_p1 = scmp.lt.s32.totalorder %s423_s12, 17 }
   0x4   : > { %p137_p2 = pnand %p384_p0, %p136_p1 }
   0x5   : > { %p158_p3 = scmp.lt.s32.totalorder (!%p137_p2), %s380_s13, 15  ;;  %v425_v0 = vmov (!%p137_p2), 0.0   ;;  %vm426_vm0 = vmmov (!%p137_p2), 0   ;;  %vm173_vm1 = vcmask (!%p137_p2), 1043456   ;;  %v168_v3 = vld [vmem:[%s471_s1] sm:$0xff] (!%p137_p2)  ;;  %vm169_vm2 = vcmask (!%p137_p2), 31744  }
   0x6   : > { %140 = sbr.rel (%p137_p2) target bundleno = 447 (0x1bf), region = 32  ;;  %397 = vmatprep.subr.mxu0 (!%p137_p2), %v425_v0  ;;  %399 = vmatprep.mubr.msk.f32.mxu0 (!%p137_p2), %vm426_vm0, %v425_v0  ;;  %v247_v4 = vld [vmem:[%s472_s2] sm:$0xf] (!%p137_p2)  ;;  %vm325_vm3 = vcmask (!%p137_p2), 60416  }
   0x7   : > { %402 = vmatprep.subr.mxu1 (!%p137_p2), %v425_v0  ;;  %404 = vmatprep.mubr.msk.f32.mxu1 (!%p137_p2), %vm426_vm0, %v425_v0 }
   0x8   : > { %403 = vmatpush3.msk.msra.mxu1 (!%p137_p2), %vm173_vm1, %v247_v4 }
   0xd   : > { %s475_s13 = smov (!%p158_p3, %s380_s13), 15 }
   0xe   : > { %s385_s14 = sshll.u32 %s475_s13, 1  ;;  %s386_s22 = sshll.u32 %s475_s13, 2 }
   0xf   : > { %s161_s17 = scalar_lea.vmem %s470_s0, %s385_s14  ;;  %s165_s25 = scalar_lea.vmem %s473_s3, %s386_s22 }
  0x10   : > { %v166_v1 = vld [vmem:[%s161_s17] sm:$0x3] }
  0x11   : > { %v167_v2 = vunpack.c.l.bf16 %v166_v1 }
  0x13   : > { %398 = vmatpush3.msk.msra.mxu0 %vm173_vm1, %v167_v2 }
  0x14   : > { %400 = vmatmul.mubr.msk.f32.vlgmr.msra.gmra.mrb[0].mxu0 %vm169_vm2, %v168_v3 }
  0xe7   : > { %v243_v5 = vpop.f32.mrb[0].mxu0 }
  0xe8   : > { %v401_v6 = vpop.f32.mrb[1].mxu0  ;;  %405 = vmatmul.mubr.msk.f32.vlgmr.msra.gmra.mrb[0].mxu1 %vm169_vm2, %v243_v5 }
 0x1bb   : > { %v320_v7 = vpop.f32.mrb[0].mxu1 }
 0x1bc   : > { %v324_v8 = vpack.c.bf16 %v320_v7, %v320_v7  ;;  %v406_v9 = vpop.f32.mrb[1].mxu1 }
 0x1be   : > { %326 = vst.msk [vmem:[%s165_s25] sm:$0xf] %vm325_vm3, %v324_v8 }
 0x1bf PF: > { %s13_s12 = sadd.s32 1, %s423_s12  }
 0x1c0   : > { %p10_p4 = scmp.ge.s32.totalorder %s13_s12, 18  }
 0x1c2   :  { %12 = sbr.rel (!%p10_p4) target bundleno = 1 (0x1), region = 62 }

// kernel: skip_adadrop_forward.26
= control target key start
LH: loop header
LB: loop body
LE: loop exit
PB: predicated region body
PF: predicated region fallthrough
CT: control target
= control target key end

     0   :  { %v450_v0 = vmov 0.0|0.0   ;;  %vm451_vm0 = vmmov 0   ;;  %v452_v5 = vmov 0.0   ;;  %v453_v6 = vmov 0   ;;  %s545_s1 = inlined_call_operand.vmem [shape: bf16[72,128], index: 1, kind: input, shape index: {}]   ;;  %s546_s0 = inlined_call_operand.vmem [shape: bf16[72,128], index: 0, kind: input, shape index: {}]   ;;  %s547_s4 = inlined_call_operand.vmem [shape: f32[8,1], index: 4, kind: input, shape index: {}]   ;;  %s548_s6 = inlined_call_operand.vmem [shape: f32[8,1], index: 6, kind: input, shape index: {}]   ;;  %s549_s3 = inlined_call_operand.vmem [shape: f32[8,72], index: 3, kind: input, shape index: {}]   ;;  %s550_s2 = inlined_call_operand.vmem [shape: f32[8,72], index: 2, kind: input, shape index: {}]   ;;  %s551_s5 = inlined_call_operand.vmem [shape: f32[8,8], index: 5, kind: input, shape index: {}]   ;;  %s552_s7 = inlined_call_operand.vmem [shape: bf16[8,128], index: 7, kind: output, shape index: {}]  }
   0x1   :  { %421 = vmatprep.subr.bf16.mxu0 %v450_v0  ;;  %433 = vmatprep.subr.bf16.mxu1 %v450_v0  ;;  %v331_v1 = vld [vmem:[%s545_s1] sm:$0xff]   ;;  %v349_v3 = vld [vmem:[%s545_s1 + $0x8] sm:$0xff]   ;;  %v350_v8 = vld [vmem:[%s545_s1 + $0x10] sm:$0xff]   ;;  %vm64_vm1 = vcmask 588800   ;;  %vm228_vm3 = vcmask 64512  }
   0x2   :  { %v315_v2 = vld [vmem:[%s546_s0] sm:$0xff]   ;;  %423 = vmatpush3.bf16.msra.mxu0 %v331_v1  ;;  %v346_v4 = vld [vmem:[%s546_s0 + $0x8] sm:$0xff]   ;;  %392 = vmatprep.mubr.msk.f32.mxu0 %vm451_vm0, %v452_v5  ;;  %v347_v9 = vld [vmem:[%s546_s0 + $0x10] sm:$0xff]  }
   0x3   :  { %435 = vmatpush3.bf16.msra.mxu1 %v315_v2  ;;  %424 = vmatprep.subr.bf16.mxu0 %v450_v0  ;;  %v211_v7 = vld [vmem:[%s547_s4] sm:$0xff]  ;;  %v351_v11 = vld [vmem:[%s545_s1 + $0x18] sm:$0xff]  }
   0x4   :  { %436 = vmatprep.subr.bf16.mxu1 %v450_v0  ;;  %413 = vmatprep.mubr.msk.f32.mxu1 %vm451_vm0, %v452_v5  ;;  %v222_v10 = vld [vmem:[%s548_s6] sm:$0xff]  ;;  %v348_v12 = vld [vmem:[%s546_s0 + $0x18] sm:$0xff]  }
   0x5   :  { %449 = vset.pattern.permute.xlu0 %v453_v6  ;;  %v52_v13 = vld [vmem:[%s545_s1 + $0x20] sm:$0xf] }
   0x6   :  { %426 = vmatpush3.bf16.msra.mxu0 %v349_v3  ;;  %214 = vperm.xlu0 %449, %v211_v7   ;;  %v34_v14 = vld [vmem:[%s546_s0 + $0x20] sm:$0xf]  ;;  %v61_v15 = vunpack.c.l.bf16 %v52_v13 }
   0x7   :  { %438 = vmatpush3.bf16.msra.mxu1 %v346_v4  ;;  %427 = vmatprep.subr.bf16.mxu0 %v450_v0  ;;  %v43_v16 = vunpack.c.l.bf16 %v34_v14  ;;  %v63_v17 = vld [vmem:[%s549_s3] sm:$0xff] }
   0x8   :  { %439 = vmatprep.subr.bf16.mxu1 %v450_v0  ;;  %v62_v18 = vld [vmem:[%s550_s2] sm:$0xff] }
   0x9   :  { %v221_v27 = vld [vmem:[%s551_s5] sm:$0xff] }
   0xa   :  { %429 = vmatpush3.bf16.msra.mxu0 %v350_v8  ;;  %225 = vperm.xlu0 %449, %v222_v10  }
   0xb   :  { %441 = vmatpush3.bf16.msra.mxu1 %v347_v9  ;;  %430 = vmatprep.subr.bf16.mxu0 %v450_v0 }
   0xc   :  { %442 = vmatprep.subr.bf16.mxu1 %v450_v0 }
   0xe   :  { %432 = vmatpush3.bf16.msra.mxu0 %v351_v11 }
   0xf   :  { %444 = vmatpush3.bf16.msra.mxu1 %v348_v12  ;;  %390 = vmatprep.subr.mxu0 %v452_v5 }
  0x10   :  { %411 = vmatprep.subr.mxu1 %v452_v5 }
  0x12   :  { %391 = vmatpush3.msra.mxu0 %v61_v15 }
  0x13   :  { %412 = vmatpush3.msra.mxu1 %v43_v16  ;;  %393 = vmatmul.mubr.msk.f32.vlgmr.msra.gmra.mrb[0].mxu0 %vm64_vm1, %v63_v17 }
  0x14   :  { %414 = vmatmul.mubr.msk.f32.vlgmr.msra.gmra.mrb[0].mxu1 %vm64_vm1, %v62_v18  ;;  %416 = vmatprep.subr.mxu0 %v452_v5 }
  0x15   :  { %418 = vmatprep.mubr.msk.f32.mxu0 %vm451_vm0, %v452_v5 }
  0x85   :  { %v215_v24 = vpop.permute.xlu0 %214 }
  0x89   :  { %v226_v29 = vpop.permute.xlu0 %225 }
  0xe6   :  { %v134_v19 = vpop.f32.mrb[0].mxu0 }
  0xe7   :  { %v207_v20 = vpop.f32.mrb[0].mxu1  ;;  %v394_v22 = vpop.f32.mrb[1].mxu0 }
  0xe8   :  { %v208_v21 = vadd.f32 %v207_v20, %v134_v19  ;;  %v415_v23 = vpop.f32.mrb[1].mxu1 }
  0xea   :  { %v217_v25 = vadd.f32 %v215_v24, %v208_v21 }
  0xec   :  { %v219_v26 = vmul.f32 0.2, %v217_v25  ;;  %vm218_vm2 = vcmp.ge.f32.partialorder %v217_v25, 0.0 }
  0xee   :  { %v220_v28 = vsel %vm218_vm2, %v217_v25, %v219_v26 }
  0xef   :  { %417 = vmatpush3.msra.mxu0 %v220_v28 }
  0xf0   :  { %419 = vmatmul.mubr.msk.f32.vlgmr.msra.gmra.mrb[2].mxu0 %vm228_vm3, %v221_v27 }
 0x1c3   :  { %v298_v30 = vpop.f32.mrb[2].mxu0 }
 0x1c4   :  { %v299_v31 = vadd.f32 %v298_v30, %v226_v29  ;;  %v420_v32 = vpop.f32.mrb[3].mxu0 }
 0x1c6   :  { %vm302_vm4 = vcmp.ge.f32.partialorder %v299_v31, 0.0  ;;  %v303_v33 = vmul.f32 0.2, %v299_v31 }
 0x1c8   :  { %v304_v34 = vsel %vm302_vm4, %v299_v31, %v303_v33 }
 0x1c9   :  { %v305_v35 = vpack.c.bf16 %v304_v34, %v304_v34 }
 0x1cb   :  { %306 = vst [vmem:[%s552_s7] sm:$0xf] %v305_v35 }

// kernel: skip_adadrop_forward.29
= control target key start
LH: loop header
LB: loop body
LE: loop exit
PB: predicated region body
PF: predicated region fallthrough
CT: control target
= control target key end

     0   :  { %s473_s12 = smov 0   ;;  %s503_s0 = inlined_call_operand.vmem [shape: bf16[16,8,8], index: 0, kind: input, shape index: {}]   ;;  %s504_s1 = inlined_call_operand.vmem [shape: f32[16,8], index: 1, kind: input, shape index: {}]   ;;  %s505_s2 = inlined_call_operand.vmem [shape: f32[8,16], index: 2, kind: input, shape index: {}]   ;;  %s506_s3 = inlined_call_operand.vmem [shape: bf16[16,16,16], index: 3, kind: output, shape index: {}]  }
   0x1 LB: > { %s402_s13 = sadd.s32 4294967295, %s451_s12   ;;  %p406_p0 = scmp.ge.s32.totalorder %s451_s12, 1  ;;  %s451_s12 = sphi %s473_s12, %s13_s12  }
   0x2   : > { %p136_p1 = scmp.lt.s32.totalorder %s451_s12, 17 }
   0x4   : > { %p137_p2 = pnand %p406_p0, %p136_p1 }
   0x5   : > { %p159_p3 = scmp.lt.s32.totalorder (!%p137_p2), %s402_s13, 15  ;;  %v170_v0 = vld [vmem:[%s504_s1] sm:$0xff] (!%p137_p2)  ;;  %vm172_vm0 = vcmask (!%p137_p2), 64512   ;;  %v171_v3 = vld [vmem:[%s504_s1 + $0x8] sm:$0xff] (!%p137_p2)  ;;  %vm344_vm1 = vcmask (!%p137_p2), 125952  }
   0x6   : > { %140 = sbr.rel (%p137_p2) target bundleno = 451 (0x1c3), region = 32  ;;  %429 = vmatprep.mubr.msk.f32.mxu0 (!%p137_p2), %vm172_vm0, %v170_v0  ;;  %v254_v4 = vld [vmem:[%s505_s2] sm:$0xff] (!%p137_p2) }
   0x7   : > { %432 = vmatprep.subr.mxu1 (!%p137_p2), %v254_v4 }
   0x8   : > { %433 = vmatpush3.msra.mxu1 (!%p137_p2), %v254_v4 }
   0xd   : > { %s508_s13 = smov (!%p159_p3, %s402_s13), 15 }
   0xe   : > { %s407_s16 = sshll.u32 %s508_s13, 2  ;;  %s418_s24 = sshll.u32 %s508_s13, 3 }
   0xf   : > { %s162_s19 = scalar_lea.vmem %s503_s0, %s407_s16  ;;  %s167_s27 = scalar_lea.vmem %s506_s3, %s418_s24 }
  0x10   : > { %v168_v1 = vld [vmem:[%s162_s19] sm:$0xf] }
  0x11   : > { %v169_v2 = vunpack.c.l.bf16 %v168_v1 }
  0x13   : > { %427 = vmatprep.subr.mxu0 %v169_v2 }
  0x14   : > { %428 = vmatpush3.msra.mxu0 %v169_v2 }
  0x15   : > { %430 = vmatmul.mubr.msk.f32.vlgmr.msra.gmra.mrb[0].mxu0 %vm172_vm0, %v171_v3 }
  0xe8   : > { %v431_v5 = vpop.f32.mrb[0].mxu0 }
  0xe9   : > { %v245_v6 = vpop.f32.mrb[1].mxu0 }
  0xea   : > { %434 = vmatprep.mubr.msk.f32.mxu1 %vm172_vm0, %v245_v6 }
  0xeb   : > { %435 = vmatmul.mubr.msk.f32.vlgmr.msra.gmra.mrb[0].mxu1 %vm172_vm0, %v431_v5 }
 0x1be   : > { %v436_v7 = vpop.f32.mrb[0].mxu1 }
 0x1bf   : > { %v420_v8 = vpack.c.bf16 %v436_v7, %v436_v7  ;;  %v327_v9 = vpop.f32.mrb[1].mxu1 }
 0x1c0   : > { %v419_v10 = vpack.c.bf16 %v327_v9, %v327_v9 }
 0x1c1   : > { %346 = vst.msk [vmem:[%s167_s27 + $0x4] sm:$0xf] %vm344_vm1, %v420_v8 }
 0x1c2   : > { %345 = vst.msk [vmem:[%s167_s27] sm:$0xf] %vm344_vm1, %v419_v10 }
 0x1c3 PF: > { %s13_s12 = sadd.s32 1, %s451_s12  }
 0x1c4   : > { %p10_p4 = scmp.ge.s32.totalorder %s13_s12, 18  }
 0x1c6   :  { %12 = sbr.rel (!%p10_p4) target bundleno = 1 (0x1), region = 62 }

// kernel: skip_adadrop_forward.31
= control target key start
LH: loop header
LB: loop body
LE: loop exit
PB: predicated region body
PF: predicated region fallthrough
CT: control target
= control target key end

     0   :  { %v226_v2 = vmov 0.0   ;;  %v227_v7 = vmov 0   ;;  %vm27_vm0 = vcmask 64512   ;;  %s272_s0 = inlined_call_operand.vmem [shape: bf16[8,512], index: 0, kind: input, shape index: {}]   ;;  %s273_s1 = inlined_call_operand.vmem [shape: f32[8,8], index: 1, kind: input, shape index: {}]   ;;  %s274_s2 = inlined_call_operand.vmem [shape: f32[8,1], index: 2, kind: input, shape index: {}]   ;;  %s275_s3 = inlined_call_operand.vmem [shape: f32[8,512], index: 3, kind: output, shape index: {}]  }
   0x1   :  { %v14_v0 = vld [vmem:[%s272_s0] sm:$0xff]  ;;  %v15_v1 = vld [vmem:[%s272_s0 + $0x8] sm:$0xff]  ;;  %95 = vmatprep.mubr.f32.mxu0 %v226_v2  ;;  %166 = vmatprep.mubr.f32.mxu1 %v226_v2 }
   0x2   :  { %v17_v3 = vunpack.c.h.bf16 %v14_v0  ;;  %v19_v4 = vunpack.c.h.bf16 %v15_v1  ;;  %v16_v5 = vunpack.c.l.bf16 %v14_v0  ;;  %v18_v6 = vunpack.c.l.bf16 %v15_v1  ;;  %209 = vset.pattern.permute.xlu0 %v227_v7  ;;  %v21_v8 = vld [vmem:[%s274_s2] sm:$0xff] }
   0x3   :  { %v20_v9 = vld [vmem:[%s273_s1] sm:$0xff]  ;;  %24 = vperm.xlu0 %209, %v21_v8  }
   0x4   :  { %31 = vmatprep.subr.mxu0 %v17_v3  ;;  %102 = vmatprep.subr.mxu1 %v19_v4 }
   0x5   :  { %32 = vmatpush1.msra.mxu0 %v16_v5  ;;  %103 = vmatpush1.msra.mxu1 %v18_v6 }
   0x6   :  { %205 = vmatmul.mubr.msk.f32.vlgmr.msra.gmra.mrb[0].mxu0 %vm27_vm0, %v20_v9  ;;  %206 = vmatmul.mubr.msk.f32.vlgmr.msra.gmra.mrb[0].mxu1 %vm27_vm0, %v20_v9 }
  0x82   :  { %v25_v10 = vpop.permute.xlu0 %24 }
  0xd9   :  { %v97_v11 = vpop.f32.mrb[0].mxu0  ;;  %v168_v12 = vpop.f32.mrb[0].mxu1 }
  0xda   :  { %v98_v13 = vadd.f32 %v97_v11, %v25_v10  ;;  %v169_v14 = vadd.f32 %v168_v12, %v25_v10  ;;  %v99_v15 = vpop.f32.mrb[1].mxu0  ;;  %v170_v16 = vpop.f32.mrb[1].mxu1 }
  0xdb   :  { %v100_v17 = vadd.f32 %v99_v15, %v25_v10  ;;  %v171_v18 = vadd.f32 %v170_v16, %v25_v10 }
  0xdc   :  { %v173_v19 = vsub.f32 0.0, %v98_v13  ;;  %v175_v20 = vsub.f32 0.0, %v169_v14 }
  0xdd   :  { %v174_v21 = vsub.f32 0.0, %v100_v17  ;;  %v176_v22 = vsub.f32 0.0, %v171_v18 }
  0xde   :  { %v177_v23 = vmul.f32 1.442695, %v173_v19  ;;  %v181_v24 = vmul.f32 1.442695, %v175_v20 }
  0xdf   :  { %v179_v25 = vmul.f32 1.442695, %v174_v21  ;;  %v183_v26 = vmul.f32 1.442695, %v176_v22 }
  0xe0   :  { %210 = vpow2.f32 %v177_v23 }
  0xe1   :  { %212 = vpow2.f32 %v181_v24 }
  0xe2   :  { %214 = vpow2.f32 %v179_v25 }
  0xe3   :  { %216 = vpow2.f32 %v183_v26 }
  0xea   :  { %v211_v27 = vpop.eup %210 }
  0xeb   :  { %v213_v28 = vpop.eup %212  ;;  %v185_v29 = vadd.f32 1.0, %v211_v27 }
  0xec   :  { %v215_v30 = vpop.eup %214  ;;  %v187_v31 = vadd.f32 1.0, %v213_v28 }
  0xed   :  { %v217_v32 = vpop.eup %216  ;;  %218 = vrcp.f32 %v185_v29  ;;  %v186_v33 = vadd.f32 1.0, %v215_v30 }
  0xee   :  { %220 = vrcp.f32 %v187_v31  ;;  %v188_v34 = vadd.f32 1.0, %v217_v32 }
  0xef   :  { %222 = vrcp.f32 %v186_v33 }
  0xf0   :  { %224 = vrcp.f32 %v188_v34 }
  0xf7   :  { %v219_v35 = vpop.eup %218 }
  0xf8   :  { %v221_v36 = vpop.eup %220  ;;  %197 = vst [vmem:[%s275_s3] sm:$0xff] %v219_v35 }
  0xf9   :  { %v223_v37 = vpop.eup %222  ;;  %199 = vst [vmem:[%s275_s3 + $0x10] sm:$0xff] %v221_v36 }
  0xfa   :  { %v225_v38 = vpop.eup %224  ;;  %198 = vst [vmem:[%s275_s3 + $0x8] sm:$0xff] %v223_v37 }
  0xfb   :  { %200 = vst [vmem:[%s275_s3 + $0x18] sm:$0xff] %v225_v38 }

// kernel: skip_adadrop_forward.30
= control target key start
LH: loop header
LB: loop body
LE: loop exit
PB: predicated region body
PF: predicated region fallthrough
CT: control target
= control target key end

     0   :  { %v797_v1 = vmov 0.0   ;;  %v798_v3 = vmov 0   ;;  %vm136_vm0 = vcmask 588800   ;;  %vm456_vm5 = vcmask 64512   ;;  %s978_s1 = inlined_call_operand.vmem [shape: bf16[72,512], index: 1, kind: input, shape index: {}]   ;;  %s979_s0 = inlined_call_operand.vmem [shape: bf16[72,512], index: 0, kind: input, shape index: {}]   ;;  %s980_s3 = inlined_call_operand.vmem [shape: f32[8,72], index: 3, kind: input, shape index: {}]   ;;  %s981_s4 = inlined_call_operand.vmem [shape: f32[8,1], index: 4, kind: input, shape index: {}]   ;;  %s982_s6 = inlined_call_operand.vmem [shape: f32[8,1], index: 6, kind: input, shape index: {}]   ;;  %s983_s2 = inlined_call_operand.vmem [shape: f32[8,72], index: 2, kind: input, shape index: {}]   ;;  %s984_s5 = inlined_call_operand.vmem [shape: f32[8,8], index: 5, kind: input, shape index: {}]   ;;  %s985_s7 = inlined_call_operand.vmem [shape: bf16[8,512], index: 7, kind: output, shape index: {}]  }
   0x1   :  { %v749_v0 = vld [vmem:[%s978_s1 + $0x4] ss:$16 sps:$4 sm:$0xff]   ;;  %204 = vmatprep.mubr.f32.mxu0 %v797_v1  ;;  %275 = vmatprep.mubr.f32.mxu1 %v797_v1  ;;  %v751_v2 = vld [vmem:[%s978_s1 + $0xc] ss:$16 sps:$4 sm:$0xff]   ;;  %v753_v4 = vld [vmem:[%s978_s1] ss:$16 sps:$4 sm:$0xff]  }
   0x2   :  { %748 = vset.pattern.permute.xlu0 %v798_v3  ;;  %647 = vmatprep.subr.bf16.mxu0 %v749_v0  ;;  %v754_v5 = vld [vmem:[%s978_s1 + $0x8] ss:$16 sps:$4 sm:$0xff]   ;;  %v755_v6 = vld [vmem:[%s978_s1 + $0x24] ss:$16 sps:$4 sm:$0xff]   ;;  %v757_v7 = vld [vmem:[%s978_s1 + $0x2c] ss:$16 sps:$4 sm:$0xff]  }
   0x3   :  { %663 = vmatprep.subr.bf16.mxu1 %v751_v2  ;;  %649 = vmatpush1.bf16.msra.mxu0 %v753_v4  ;;  %v759_v8 = vld [vmem:[%s978_s1 + $0x20] ss:$16 sps:$4 sm:$0xff]   ;;  %v760_v9 = vld [vmem:[%s978_s1 + $0x28] ss:$16 sps:$4 sm:$0xff]   ;;  %v761_v10 = vld [vmem:[%s978_s1 + $0x44] ss:$16 sps:$4 sm:$0xff]  }
   0x4   :  { %665 = vmatpush1.bf16.msra.mxu1 %v754_v5  ;;  %651 = vmatprep.subr.bf16.mxu0 %v755_v6  ;;  %v763_v11 = vld [vmem:[%s978_s1 + $0x4c] ss:$16 sps:$4 sm:$0xff]   ;;  %v765_v12 = vld [vmem:[%s978_s1 + $0x40] ss:$16 sps:$4 sm:$0xff]   ;;  %v766_v13 = vld [vmem:[%s978_s1 + $0x48] ss:$16 sps:$4 sm:$0xff]  }
   0x5   :  { %667 = vmatprep.subr.bf16.mxu1 %v757_v7  ;;  %v767_v14 = vld [vmem:[%s978_s1 + $0x64] ss:$16 sps:$4 sm:$0xff]   ;;  %v769_v15 = vld [vmem:[%s978_s1 + $0x6c] ss:$16 sps:$4 sm:$0xff]   ;;  %v771_v18 = vld [vmem:[%s978_s1 + $0x60] ss:$16 sps:$4 sm:$0xff]  }
   0x6   :  { %v96_v16 = vld [vmem:[%s978_s1 + $0x80] sm:$0xff]  ;;  %v97_v17 = vld [vmem:[%s978_s1 + $0x88] sm:$0xff] }
   0x7   :  { %653 = vmatpush1.bf16.msra.mxu0 %v759_v8  ;;  %v772_v19 = vld [vmem:[%s978_s1 + $0x68] ss:$16 sps:$4 sm:$0xff]   ;;  %v131_v20 = vunpack.c.h.bf16 %v96_v16  ;;  %v133_v21 = vunpack.c.h.bf16 %v97_v17  ;;  %v130_v22 = vunpack.c.l.bf16 %v96_v16  ;;  %v132_v23 = vunpack.c.l.bf16 %v97_v17  ;;  %v773_v24 = vld [vmem:[%s979_s0 + $0x4] ss:$16 sps:$4 sm:$0xff]   ;;  %v776_v25 = vld [vmem:[%s979_s0 + $0xc] ss:$16 sps:$4 sm:$0xff]  }
   0x8   :  { %669 = vmatpush1.bf16.msra.mxu1 %v760_v9  ;;  %655 = vmatprep.subr.bf16.mxu0 %v761_v10  ;;  %v775_v26 = vld [vmem:[%s979_s0] ss:$16 sps:$4 sm:$0xff]   ;;  %v778_v27 = vld [vmem:[%s979_s0 + $0x8] ss:$16 sps:$4 sm:$0xff]   ;;  %v779_v29 = vld [vmem:[%s979_s0 + $0x24] ss:$16 sps:$4 sm:$0xff]  }
   0x9   :  { %671 = vmatprep.subr.bf16.mxu1 %v763_v11  ;;  %v135_v28 = vld [vmem:[%s980_s3] sm:$0xff]  ;;  %v782_v30 = vld [vmem:[%s979_s0 + $0x2c] ss:$16 sps:$4 sm:$0xff]   ;;  %v784_v32 = vld [vmem:[%s979_s0 + $0x28] ss:$16 sps:$4 sm:$0xff]  }
   0xa   :  { %v781_v31 = vld [vmem:[%s979_s0 + $0x20] ss:$16 sps:$4 sm:$0xff]   ;;  %v785_v34 = vld [vmem:[%s979_s0 + $0x44] ss:$16 sps:$4 sm:$0xff]   ;;  %v788_v35 = vld [vmem:[%s979_s0 + $0x4c] ss:$16 sps:$4 sm:$0xff]  }
   0xb   :  { %657 = vmatpush1.bf16.msra.mxu0 %v765_v12  ;;  %v427_v33 = vld [vmem:[%s981_s4] sm:$0xff]  ;;  %v790_v37 = vld [vmem:[%s979_s0 + $0x48] ss:$16 sps:$4 sm:$0xff]   ;;  %v794_v40 = vld [vmem:[%s979_s0 + $0x6c] ss:$16 sps:$4 sm:$0xff]  }
   0xc   :  { %673 = vmatpush1.bf16.msra.mxu1 %v766_v13  ;;  %659 = vmatprep.subr.bf16.mxu0 %v767_v14  ;;  %v787_v36 = vld [vmem:[%s979_s0 + $0x40] ss:$16 sps:$4 sm:$0xff]   ;;  %v791_v39 = vld [vmem:[%s979_s0 + $0x64] ss:$16 sps:$4 sm:$0xff]   ;;  %v43_v42 = vld [vmem:[%s979_s0 + $0x88] sm:$0xff] }
   0xd   :  { %675 = vmatprep.subr.bf16.mxu1 %v769_v15  ;;  %430 = vperm.xlu0 %748, %v427_v33   ;;  %v450_v38 = vld [vmem:[%s982_s6] sm:$0xff]  ;;  %v796_v44 = vld [vmem:[%s979_s0 + $0x68] ss:$16 sps:$4 sm:$0xff]   ;;  %v79_v46 = vunpack.c.h.bf16 %v43_v42  ;;  %v78_v48 = vunpack.c.l.bf16 %v43_v42 }
   0xe   :  { %v42_v41 = vld [vmem:[%s979_s0 + $0x80] sm:$0xff] }
   0xf   :  { %661 = vmatpush1.bf16.msra.mxu0 %v771_v18  ;;  %v793_v43 = vld [vmem:[%s979_s0 + $0x60] ss:$16 sps:$4 sm:$0xff]   ;;  %v77_v45 = vunpack.c.h.bf16 %v42_v41  ;;  %v76_v47 = vunpack.c.l.bf16 %v42_v41 }
  0x10   :  { %677 = vmatpush1.bf16.msra.mxu1 %v772_v19  ;;  %156 = vmatprep.subr.mxu0 %v131_v20  ;;  %v134_v49 = vld [vmem:[%s983_s2] sm:$0xff] }
  0x11   :  { %227 = vmatprep.subr.mxu1 %v133_v21  ;;  %453 = vperm.xlu0 %748, %v450_v38  }
  0x13   :  { %157 = vmatpush1.msra.mxu0 %v130_v22 }
  0x14   :  { %228 = vmatpush1.msra.mxu1 %v132_v23  ;;  %679 = vmatprep.subr.bf16.mxu0 %v773_v24 }
  0x15   :  { %695 = vmatprep.subr.bf16.mxu1 %v776_v25  ;;  %636 = vmatmul.mubr.msk.f32.vlgmr.msra.gmra.mrb[0].mxu0 %vm136_vm0, %v135_v28 }
  0x16   :  { %637 = vmatmul.mubr.msk.f32.vlgmr.msra.gmra.mrb[0].mxu1 %vm136_vm0, %v135_v28  ;;  %681 = vmatpush1.bf16.msra.mxu0 %v775_v26 }
  0x17   :  { %697 = vmatpush1.bf16.msra.mxu1 %v778_v27  ;;  %683 = vmatprep.subr.bf16.mxu0 %v779_v29 }
  0x18   :  { %699 = vmatprep.subr.bf16.mxu1 %v782_v30  ;;  %349 = vmatprep.mubr.f32.mxu0 %v797_v1 }
  0x19   :  { %420 = vmatprep.mubr.f32.mxu1 %v797_v1 }
  0x1a   :  { %685 = vmatpush1.bf16.msra.mxu0 %v781_v31 }
  0x1b   :  { %701 = vmatpush1.bf16.msra.mxu1 %v784_v32  ;;  %687 = vmatprep.subr.bf16.mxu0 %v785_v34 }
  0x1c   :  { %703 = vmatprep.subr.bf16.mxu1 %v788_v35 }
  0x1e   :  { %689 = vmatpush1.bf16.msra.mxu0 %v787_v36 }
  0x1f   :  { %705 = vmatpush1.bf16.msra.mxu1 %v790_v37  ;;  %691 = vmatprep.subr.bf16.mxu0 %v791_v39 }
  0x20   :  { %707 = vmatprep.subr.bf16.mxu1 %v794_v40 }
  0x22   :  { %693 = vmatpush1.bf16.msra.mxu0 %v793_v43 }
  0x23   :  { %709 = vmatpush1.bf16.msra.mxu1 %v796_v44  ;;  %301 = vmatprep.subr.mxu0 %v77_v45 }
  0x24   :  { %372 = vmatprep.subr.mxu1 %v79_v46 }
  0x26   :  { %302 = vmatpush1.msra.mxu0 %v76_v47 }
  0x27   :  { %373 = vmatpush1.msra.mxu1 %v78_v48  ;;  %638 = vmatmul.mubr.msk.f32.vlgmr.msra.gmra.mrb[0].mxu0 %vm136_vm0, %v134_v49 }
  0x28   :  { %639 = vmatmul.mubr.msk.f32.vlgmr.msra.gmra.mrb[0].mxu1 %vm136_vm0, %v134_v49  ;;  %524 = vmatprep.mubr.f32.mxu0 %v797_v1 }
  0x29   :  { %595 = vmatprep.mubr.f32.mxu1 %v797_v1  ;;  %v449_v1 = vld [vmem:[%s984_s5] sm:$0xff] }
  0x8c   :  { %v431_v50 = vpop.permute.xlu0 %430 }
  0x90   :  { %v454_v4 = vpop.permute.xlu0 %453 }
  0xfa   :  { %v351_v51 = vpop.f32.mrb[0].mxu0 }
  0xfb   :  { %v422_v52 = vpop.f32.mrb[0].mxu1  ;;  %v433_v53 = vadd.f32 %v431_v50, %v351_v51  ;;  %v353_v55 = vpop.f32.mrb[1].mxu0 }
  0xfc   :  { %v435_v54 = vadd.f32 %v431_v50, %v422_v52  ;;  %v424_v56 = vpop.f32.mrb[1].mxu1  ;;  %v434_v57 = vadd.f32 %v431_v50, %v353_v55 }
  0xfd   :  { %v436_v58 = vadd.f32 %v431_v50, %v424_v56  ;;  %vm437_vm1 = vcmp.ge.f32.partialorder %v433_v53, 0.0  ;;  %v441_v59 = vmul.f32 0.2, %v433_v53 }
  0xfe   :  { %vm439_vm2 = vcmp.ge.f32.partialorder %v435_v54, 0.0  ;;  %v443_v60 = vmul.f32 0.2, %v435_v54  ;;  %v442_v61 = vmul.f32 0.2, %v434_v57  ;;  %vm438_vm3 = vcmp.ge.f32.partialorder %v434_v57, 0.0 }
  0xff   :  { %v444_v62 = vmul.f32 0.2, %v436_v58  ;;  %vm440_vm4 = vcmp.ge.f32.partialorder %v436_v58, 0.0  ;;  %v445_v2 = vsel %vm437_vm1, %v433_v53, %v441_v59 }
 0x100   :  { %v446_v63 = vsel %vm438_vm3, %v434_v57, %v442_v61  ;;  %v447_v3 = vsel %vm439_vm2, %v435_v54, %v443_v60 }
 0x101   :  { %v448_v0 = vsel %vm440_vm4, %v436_v58, %v444_v62  ;;  %460 = vmatprep.subr.mxu0 %v446_v63 }
 0x102   :  { %531 = vmatprep.subr.mxu1 %v448_v0  ;;  %461 = vmatpush1.msra.mxu0 %v445_v2 }
 0x103   :  { %532 = vmatpush1.msra.mxu1 %v447_v3  ;;  %640 = vmatmul.mubr.msk.f32.vlgmr.msra.gmra.mrb[2].mxu0 %vm456_vm5, %v449_v1 }
 0x104   :  { %641 = vmatmul.mubr.msk.f32.vlgmr.msra.gmra.mrb[2].mxu1 %vm456_vm5, %v449_v1 }
 0x1d6   :  { %v526_v5 = vpop.f32.mrb[2].mxu0 }
 0x1d7   :  { %v597_v6 = vpop.f32.mrb[2].mxu1  ;;  %v527_v7 = vadd.f32 %v526_v5, %v454_v4  ;;  %v528_v9 = vpop.f32.mrb[3].mxu0 }
 0x1d8   :  { %v598_v8 = vadd.f32 %v597_v6, %v454_v4  ;;  %v599_v10 = vpop.f32.mrb[3].mxu1  ;;  %v529_v11 = vadd.f32 %v528_v9, %v454_v4 }
 0x1d9   :  { %v600_v12 = vadd.f32 %v599_v10, %v454_v4  ;;  %vm602_vm6 = vcmp.ge.f32.partialorder %v527_v7, 0.0  ;;  %v606_v13 = vmul.f32 0.2, %v527_v7 }
 0x1da   :  { %vm604_vm7 = vcmp.ge.f32.partialorder %v598_v8, 0.0  ;;  %v608_v14 = vmul.f32 0.2, %v598_v8  ;;  %vm603_vm8 = vcmp.ge.f32.partialorder %v529_v11, 0.0  ;;  %v607_v15 = vmul.f32 0.2, %v529_v11 }
 0x1db   :  { %vm605_vm9 = vcmp.ge.f32.partialorder %v600_v12, 0.0  ;;  %v609_v16 = vmul.f32 0.2, %v600_v12  ;;  %v610_v17 = vsel %vm602_vm6, %v527_v7, %v606_v13 }
 0x1dc   :  { %v612_v18 = vsel %vm604_vm7, %v598_v8, %v608_v14  ;;  %v611_v19 = vsel %vm603_vm8, %v529_v11, %v607_v15 }
 0x1dd   :  { %v613_v20 = vsel %vm605_vm9, %v600_v12, %v609_v16  ;;  %v644_v21 = vpack.c.bf16 %v611_v19, %v610_v17 }
 0x1de   :  { %v645_v22 = vpack.c.bf16 %v613_v20, %v612_v18 }
 0x1df   :  { %630 = vst [vmem:[%s985_s7] sm:$0xff] %v644_v21 }
 0x1e0   :  { %631 = vst [vmem:[%s985_s7 + $0x8] sm:$0xff] %v645_v22 }

</bundles_post_ra>
